<compile_context>
chip_gen: v7x
topology: tpu7x:2x2x1
jax: 0.10.0
libtpu: 0.0.40
codegen_flags: <defaults>
</compile_context>

<pallas_src>
import functools

import jax
import jax.numpy as jnp
from jax import lax
from jax.experimental import pallas as pl
from jax.experimental.pallas import tpu as pltpu


# ---------------------------------------------------------------------------
# Fused Pallas kernel: one grid step == Bblk batch elements.
# ---------------------------------------------------------------------------
def _fused_encoder_kernel(xl_ref, w1_ref, b1_ref, rbd_ref, w2c_ref, b2_ref,
                          pbd_ref, pf_ref, bfc_ref, o_ref):
    """conv1+ReLU -> conv2+ReLU -> avg-pool -> FC, all in VMEM, all on the MXU.

    xl_ref : (Bblk*H, kH*W*Cin)        bf16 conv1 LHS, y-taps merged along K
    w1_ref : (kH*W*Cin, W*C1)          bf16 banded conv1 weights (x-pad folded)
    b1_ref : (1, W*C1)                 f32  conv1 bias tiled across x
    rbd_ref: (kH, Ho2*Bblk, H*Bblk)    bf16 block-diag stride-2 row selection
    w2c_ref: (W*C1, kH*Wo2*C2)         bf16 banded conv2 weights, taps along N
    b2_ref : (1, Wo2*C2)               f32  conv2 bias tiled across x
    pbd_ref: (Bblk, Ho2*Bblk)          bf16 block-diag row pool (1/Ho2)
    pf_ref : (Wo2*C2, out_pad)         bf16 lane pool (1/Wo2) folded into FC
    bfc_ref: (1, out_pad)              f32  FC bias (zero-padded to 128 lanes)
    o_ref  : (Bblk, out_pad)           f32  context vectors for this block
    """
    kH = rbd_ref.shape[0]
    n2 = w2c_ref.shape[1] // kH          # Wo2*C2 (= 128 for the default config)

    # ---- conv1 (3x3, stride 1, pad 1): ONE lane-dense MXU GEMM, M = Bblk*H.
    h1 = jnp.dot(xl_ref[...], w1_ref[...], preferred_element_type=jnp.float32)
    h1 = jnp.maximum(h1 + b1_ref[...], 0.0).astype(jnp.bfloat16)   # (Bblk*H, 128)

    # ---- conv2 (3x3, stride 2, pad 1): one GEMM over all y-taps (N = kH*128),
    #      then per-tap block-diagonal 0/1 selection matmuls (stride-2 rows +
    #      y zero-pad), accumulated in f32.
    hcat = jnp.dot(h1, w2c_ref[...], preferred_element_type=jnp.float32)
    hcat = hcat.astype(jnp.bfloat16)                                # (Bblk*H, kH*128)
    acc = None
    for dy in range(kH):
        part = jnp.dot(rbd_ref[dy], hcat[:, dy * n2:(dy + 1) * n2],
                       preferred_element_type=jnp.float32)
        acc = part if acc is None else acc + part
    h2 = jnp.maximum(acc + b2_ref[...], 0.0).astype(jnp.bfloat16)   # (Bblk*Ho2, 128)

    # ---- global average pool + FC head (bf16 operands, f32 accumulate).
    pooled = jnp.dot(pbd_ref[...], h2, preferred_element_type=jnp.float32)
    out = jnp.dot(pooled.astype(jnp.bfloat16), pf_ref[...],
                  preferred_element_type=jnp.float32)
    o_ref[...] = out + bfc_ref[...]


# ---------------------------------------------------------------------------
# One-time weight re-layout: convs as banded (Toeplitz) GEMM matrices.
# ---------------------------------------------------------------------------
def _conv1_weight_gemm(w_oihw, w_in):
    """Stride-1, pad-1 conv -> (kH*W*Cin, W*Cout) merged banded GEMM weights.

    K lane order = (ky, x_in, cin); x-padding is folded into the valid mask.
    """
    cout, cin, kh, kw = w_oihw.shape
    x_in = jnp.arange(w_in)[:, None]            # input x (unpadded)
    ox = jnp.arange(w_in)[None, :]              # output x
    kx = x_in - ox + 1                          # kernel tap (pad = 1)
    valid = (kx >= 0) & (kx < kw)
    w_t = jnp.transpose(w_oihw, (2, 3, 1, 0))                # (kh, kw, cin, cout)
    g = w_t[:, jnp.clip(kx, 0, kw - 1)]                      # (kh, x_in, ox, cin, cout)
    g = jnp.where(valid[None, :, :, None, None], g, 0.0)
    g = jnp.transpose(g, (0, 1, 3, 2, 4))                    # (kh, x_in, cin, ox, cout)
    return g.reshape(kh * w_in * cin, w_in * cout)


def _conv2_weight_gemm(w_oihw, w_in):
    """Stride-2, pad-1 conv -> (W*Cin, kH*(W//2)*Cout) banded weights, taps on N."""
    cout, cin, kh, kw = w_oihw.shape
    wo = w_in // 2
    x1 = jnp.arange(w_in)[:, None]              # input x
    ox = jnp.arange(wo)[None, :]                # output x
    kx = x1 - 2 * ox + 1                        # kernel tap (pad = 1, stride 2)
    valid = (kx >= 0) & (kx < kw)
    w_t = jnp.transpose(w_oihw, (2, 3, 1, 0))                # (kh, kw, cin, cout)
    g = w_t[:, jnp.clip(kx, 0, kw - 1)]                      # (kh, x1, ox, cin, cout)
    g = jnp.where(valid[None, :, :, None, None], g, 0.0)
    g = jnp.transpose(g, (1, 3, 0, 2, 4))                    # (x1, cin, kh, ox, cout)
    return g.reshape(w_in * cin, kh * wo * cout)


def _row_select_stride2(h_in, kh):
    """(kH, H//2, H) 0/1 matrices: R[dy, oy, y] = 1 iff y == 2*oy + dy - 1."""
    ho = h_in // 2
    dy = jnp.arange(kh)[:, None, None]
    oy = jnp.arange(ho)[None, :, None]
    y = jnp.arange(h_in)[None, None, :]
    return (y == 2 * oy + dy - 1).astype(jnp.float32)


def _prepare_kernel_params(params, h_in, w_in, batch_block):
    c1 = params["b1"].shape[0]
    c2 = params["b2"].shape[0]
    kh = params["w1"].shape[2]
    wo1, ho2, wo2 = w_in, h_in // 2, w_in // 2
    n1, n2 = wo1 * c1, wo2 * c2
    out_size = params["w_fc"].shape[1]
    # Fail loudly if the lane-dense layout assumptions are violated.
    assert n1 % 128 == 0 and n2 % 128 == 0, (
        f"lane-dense layout needs W*C1 ({n1}) and (W//2)*C2 ({n2}) to be "
        "multiples of 128")
    assert h_in % 2 == 0 and w_in % 2 == 0 and kh == 3
    out_pad = -(-out_size // 128) * 128

    eye_b = jnp.eye(batch_block, dtype=jnp.float32)
    r = _row_select_stride2(h_in, kh)                                  # (kh, ho2, h)
    rbd = jnp.stack([jnp.kron(eye_b, r[dy]) for dy in range(kh)])      # block-diag
    pbd = jnp.kron(eye_b, jnp.full((1, ho2), 1.0 / ho2, jnp.float32))  # row pool

    pf = jnp.tile(params["w_fc"], (wo2, 1)) / float(wo2)               # lane pool + FC
    pf = jnp.pad(pf, ((0, 0), (0, out_pad - out_size)))                # lane-dense out
    bfc = jnp.pad(params["b_fc"], (0, out_pad - out_size)).reshape(1, out_pad)

    return {
        "W1": _conv1_weight_gemm(params["w1"], w_in).astype(jnp.bfloat16),
        "b1t": jnp.tile(params["b1"], wo1).reshape(1, n1).astype(jnp.float32),
        "Rbd": rbd.astype(jnp.bfloat16),
        "W2c": _conv2_weight_gemm(params["w2"], w_in).astype(jnp.bfloat16),
        "b2t": jnp.tile(params["b2"], wo2).reshape(1, n2).astype(jnp.float32),
        "Pbd": pbd.astype(jnp.bfloat16),
        "PF": pf.astype(jnp.bfloat16),
        "bfc": bfc.astype(jnp.float32),
    }


# ---------------------------------------------------------------------------
# Forward: minimal layout glue + ONE pallas_call, all inside one jit.
# ---------------------------------------------------------------------------
@functools.partial(jax.jit, static_argnames=("out_size",))
def _cnn_encoder_forward(kp, spectrogram_nchw, *, out_size):
    x = spectrogram_nchw.astype(jnp.float32)
    B, Cin, H, W = x.shape
    kH = kp["Rbd"].shape[0]
    Bblk = kp["Pbd"].shape[0]
    K1, N1 = kp["W1"].shape
    N2 = kp["b2t"].shape[1]
    out_pad = kp["bfc"].shape[1]
    assert K1 == kH * W * Cin, "input geometry does not match prepared weights"

    n_blocks = -(-B // Bblk)
    Bpad = n_blocks * Bblk
    if Bpad != B:                       # pad batch to a multiple of Bblk (zeros)
        x = jnp.pad(x, ((0, Bpad - B), (0, 0), (0, 0), (0, 0)))

    # NCHW -> NHWC, y zero-pad (x-pad folded into W1), merge kH y-taps along K,
    # cast to bf16 (halves per-step input DMA bytes).
    xh = jnp.transpose(x, (0, 2, 3, 1))                        # (Bp, H, W, Cin)
    xp = jnp.pad(xh, ((0, 0), (1, 1), (0, 0), (0, 0)))         # (Bp, H+2, W, Cin)
    taps = jnp.stack([xp[:, dy:dy + H] for dy in range(kH)], axis=2)
    xl = taps.reshape(Bpad * H, kH * W * Cin).astype(jnp.bfloat16)   # (Bp*16, 192)

    out = pl.pallas_call(
        _fused_encoder_kernel,
        out_shape=jax.ShapeDtypeStruct((Bpad, out_pad), jnp.float32),
        grid=(n_blocks,),
        in_specs=[
            pl.BlockSpec((Bblk * H, K1), lambda i: (i, 0)),
            pl.BlockSpec((K1, N1), lambda i: (0, 0)),
            pl.BlockSpec((1, N1), lambda i: (0, 0)),
            pl.BlockSpec(kp["Rbd"].shape, lambda i: (0, 0, 0)),
            pl.BlockSpec(kp["W2c"].shape, lambda i: (0, 0)),
            pl.BlockSpec((1, N2), lambda i: (0, 0)),
            pl.BlockSpec(kp["Pbd"].shape, lambda i: (0, 0)),
            pl.BlockSpec(kp["PF"].shape, lambda i: (0, 0)),
            pl.BlockSpec((1, out_pad), lambda i: (0, 0)),
        ],
        out_specs=pl.BlockSpec((Bblk, out_pad), lambda i: (i, 0)),
        compiler_params=pltpu.CompilerParams(
            dimension_semantics=("parallel",),   # batch blocks -> both TCs on v7x
        ),
    )(xl, kp["W1"], kp["b1t"], kp["Rbd"], kp["W2c"], kp["b2t"],
      kp["Pbd"], kp["PF"], kp["bfc"])
    return out[:B, :out_size]


# ---------------------------------------------------------------------------
# CNNEncoder: parameter construction + forward pass
# ---------------------------------------------------------------------------
class CNNEncoder:
    """Encodes an audio spectrogram (NCHW) into a (B, output_size) latent."""

    def __init__(self, output_size, in_channels=4, c1=8, c2=16,
                 height=16, width=16, batch_block=16, seed=0):
        # batch_block=16 -> conv1 GEMM M=256 (fills v6e/v7x MXU); use 8 on v5e.
        self.output_size = output_size
        k = jax.random.PRNGKey(seed)
        k1, k2, k3, k4, k5, k6 = jax.random.split(k, 6)
        s1 = 1.0 / jnp.sqrt(in_channels * 9.0)
        s2 = 1.0 / jnp.sqrt(c1 * 9.0)
        s3 = 1.0 / jnp.sqrt(float(c2))
        self.params = {
            "w1": jax.random.uniform(k1, (c1, in_channels, 3, 3), jnp.float32, -s1, s1),
            "b1": jax.random.uniform(k2, (c1,), jnp.float32, -s1, s1),
            "w2": jax.random.uniform(k3, (c2, c1, 3, 3), jnp.float32, -s2, s2),
            "b2": jax.random.uniform(k4, (c2,), jnp.float32, -s2, s2),
            "w_fc": jax.random.uniform(k5, (c2, output_size), jnp.float32, -s3, s3),
            "b_fc": jax.random.uniform(k6, (output_size,), jnp.float32, -s3, s3),
        }
        # One-time re-layout into MXU-friendly banded / block-diagonal matrices.
        self.kernel_params = _prepare_kernel_params(
            self.params, height, width, batch_block)

    def __call__(self, spectrogram_nchw):
        return _cnn_encoder_forward(self.kernel_params, spectrogram_nchw,
                                    out_size=self.output_size)


# ---------------------------------------------------------------------------
# Pure-JAX reference (f32) for a loose-tolerance correctness check.
# ---------------------------------------------------------------------------
def _reference_forward(p, spec_nchw):
    x = jnp.transpose(spec_nchw, (0, 2, 3, 1)).astype(jnp.float32)

    def conv(v, w, b, stride):
        w_hwio = jnp.transpose(w, (2, 3, 1, 0))
        y = lax.conv_general_dilated(
            v, w_hwio, window_strides=(stride, stride),
            padding=((1, 1), (1, 1)),
            dimension_numbers=("NHWC", "HWIO", "NHWC"))
        return jnp.maximum(y + b, 0.0)

    h1 = conv(x, p["w1"], p["b1"], 1)
    h2 = conv(h1, p["w2"], p["b2"], 2)
    pooled = jnp.mean(h2, axis=(1, 2))
    return pooled @ p["w_fc"] + p["b_fc"]


if __name__ == "__main__":
    key = jax.random.PRNGKey(0)
    # spectrogram: batch=2, channels=4, freq=16, time=16 (NCHW, like PyTorch)
    spectrogram = jax.random.normal(key, (2, 4, 16, 16), dtype=jnp.float32)

    encoder = CNNEncoder(output_size=32)
    context = encoder(spectrogram)
    context = jax.block_until_ready(context)

    assert context.shape == (2, 32), context.shape
    assert context.dtype == jnp.float32
    assert bool(jnp.all(jnp.isfinite(context)))

    # Loose tolerance: the fused kernel uses bf16 MXU operands (f32 accumulate).
    ref = _reference_forward(encoder.params, spectrogram)
    max_err = float(jnp.max(jnp.abs(context - ref)))
    assert max_err < 5e-2, f"max |kernel - f32 reference| = {max_err}"

    print("KERNEL_OK")
</pallas_src>

<mosaic_0001>
module attributes {stable_mosaic.version = 11 : i64} {
  func.func @_fused_encoder_kernel(%arg0: i32, %arg1: memref<256x192xbf16, #tpu.memory_space<vmem>>, %arg2: memref<192x128xbf16, #tpu.memory_space<vmem>>, %arg3: memref<1x128xf32, #tpu.memory_space<vmem>>, %arg4: memref<3x128x256xbf16, #tpu.memory_space<vmem>>, %arg5: memref<128x384xbf16, #tpu.memory_space<vmem>>, %arg6: memref<1x128xf32, #tpu.memory_space<vmem>>, %arg7: memref<16x128xbf16, #tpu.memory_space<vmem>>, %arg8: memref<128x128xbf16, #tpu.memory_space<vmem>>, %arg9: memref<1x128xf32, #tpu.memory_space<vmem>>, %arg10: memref<16x128xf32, #tpu.memory_space<vmem>>) attributes {dimension_semantics = [#tpu.dimension_semantics<parallel>], iteration_bounds = array<i64: 1>, scalar_prefetch = 0 : i64, scratch_operands = 0 : i64, tpu.core_type = #tpu.core_type<tc>, window_params = [{transform_indices = @transform_0, window_bounds = array<i64: 256, 192>}, {pipeline_mode = #tpu.pipeline_mode<synchronous>, transform_indices = @transform_1, window_bounds = array<i64: 192, 128>}, {pipeline_mode = #tpu.pipeline_mode<synchronous>, transform_indices = @transform_2, window_bounds = array<i64: 1, 128>}, {pipeline_mode = #tpu.pipeline_mode<synchronous>, transform_indices = @transform_3, window_bounds = array<i64: 3, 128, 256>}, {pipeline_mode = #tpu.pipeline_mode<synchronous>, transform_indices = @transform_4, window_bounds = array<i64: 128, 384>}, {pipeline_mode = #tpu.pipeline_mode<synchronous>, transform_indices = @transform_5, window_bounds = array<i64: 1, 128>}, {pipeline_mode = #tpu.pipeline_mode<synchronous>, transform_indices = @transform_6, window_bounds = array<i64: 16, 128>}, {pipeline_mode = #tpu.pipeline_mode<synchronous>, transform_indices = @transform_7, window_bounds = array<i64: 128, 128>}, {pipeline_mode = #tpu.pipeline_mode<synchronous>, transform_indices = @transform_8, window_bounds = array<i64: 1, 128>}, {transform_indices = @transform_9, window_bounds = array<i64: 16, 128>}]} {
    %c0 = arith.constant 0 : index
    %c0_0 = arith.constant 0 : index
    %0 = vector.load %arg1[%c0, %c0_0] : memref<256x192xbf16, #tpu.memory_space<vmem>>, vector<256x192xbf16>
    %c0_1 = arith.constant 0 : index
    %c0_2 = arith.constant 0 : index
    %1 = vector.load %arg2[%c0_1, %c0_2] : memref<192x128xbf16, #tpu.memory_space<vmem>>, vector<192x128xbf16>
    %cst = arith.constant dense<0.000000e+00> : vector<256x128xf32>
    %2 = tpu.matmul %0, %1, %cst {dimension_numbers = #tpu.dot_dimension_numbers<[1], [0], [0], [1], [0, 0, 1, 1], [], []>} : vector<256x192xbf16>, vector<192x128xbf16>, vector<256x128xf32> -> vector<256x128xf32>
    %c0_3 = arith.constant 0 : index
    %c0_4 = arith.constant 0 : index
    %3 = vector.load %arg3[%c0_3, %c0_4] : memref<1x128xf32, #tpu.memory_space<vmem>>, vector<1x128xf32>
    %4 = vector.broadcast %3 : vector<1x128xf32> to vector<256x128xf32>
    %5 = arith.addf %2, %4 : vector<256x128xf32>
    %cst_5 = arith.constant 0.000000e+00 : f32
    %6 = vector.broadcast %cst_5 : f32 to vector<256x128xf32>
    %7 = arith.maximumf %5, %6 : vector<256x128xf32>
    %8 = arith.truncf %7 : vector<256x128xf32> to vector<256x128xbf16>
    %c0_6 = arith.constant 0 : index
    %c0_7 = arith.constant 0 : index
    %9 = vector.load %arg5[%c0_6, %c0_7] : memref<128x384xbf16, #tpu.memory_space<vmem>>, vector<128x384xbf16>
    %cst_8 = arith.constant dense<0.000000e+00> : vector<256x384xf32>
    %10 = tpu.matmul %8, %9, %cst_8 {dimension_numbers = #tpu.dot_dimension_numbers<[1], [0], [0], [1], [0, 0, 1, 1], [], []>} : vector<256x128xbf16>, vector<128x384xbf16>, vector<256x384xf32> -> vector<256x384xf32>
    %11 = arith.truncf %10 : vector<256x384xf32> to vector<256x384xbf16>
    %c0_9 = arith.constant 0 : index
    %c0_10 = arith.constant 0 : index
    %c0_11 = arith.constant 0 : index
    %12 = vector.load %arg4[%c0_9, %c0_10, %c0_11] : memref<3x128x256xbf16, #tpu.memory_space<vmem>>, vector<1x128x256xbf16>
    %13 = vector.shape_cast %12 : vector<1x128x256xbf16> to vector<128x256xbf16>
    %14 = vector.extract_strided_slice %11 {offsets = [0, 0], sizes = [256, 128], strides = [1, 1]} : vector<256x384xbf16> to vector<256x128xbf16>
    %cst_12 = arith.constant dense<0.000000e+00> : vector<128x128xf32>
    %15 = tpu.matmul %13, %14, %cst_12 {dimension_numbers = #tpu.dot_dimension_numbers<[1], [0], [0], [1], [0, 0, 1, 1], [], []>} : vector<128x256xbf16>, vector<256x128xbf16>, vector<128x128xf32> -> vector<128x128xf32>
    %c1 = arith.constant 1 : index
    %c0_13 = arith.constant 0 : index
    %c0_14 = arith.constant 0 : index
    %16 = vector.load %arg4[%c1, %c0_13, %c0_14] : memref<3x128x256xbf16, #tpu.memory_space<vmem>>, vector<1x128x256xbf16>
    %17 = vector.shape_cast %16 : vector<1x128x256xbf16> to vector<128x256xbf16>
    %18 = vector.extract_strided_slice %11 {offsets = [0, 128], sizes = [256, 128], strides = [1, 1]} : vector<256x384xbf16> to vector<256x128xbf16>
    %cst_15 = arith.constant dense<0.000000e+00> : vector<128x128xf32>
    %19 = tpu.matmul %17, %18, %cst_15 {dimension_numbers = #tpu.dot_dimension_numbers<[1], [0], [0], [1], [0, 0, 1, 1], [], []>} : vector<128x256xbf16>, vector<256x128xbf16>, vector<128x128xf32> -> vector<128x128xf32>
    %20 = arith.addf %15, %19 : vector<128x128xf32>
    %c2 = arith.constant 2 : index
    %c0_16 = arith.constant 0 : index
    %c0_17 = arith.constant 0 : index
    %21 = vector.load %arg4[%c2, %c0_16, %c0_17] : memref<3x128x256xbf16, #tpu.memory_space<vmem>>, vector<1x128x256xbf16>
    %22 = vector.shape_cast %21 : vector<1x128x256xbf16> to vector<128x256xbf16>
    %23 = vector.extract_strided_slice %11 {offsets = [0, 256], sizes = [256, 128], strides = [1, 1]} : vector<256x384xbf16> to vector<256x128xbf16>
    %cst_18 = arith.constant dense<0.000000e+00> : vector<128x128xf32>
    %24 = tpu.matmul %22, %23, %cst_18 {dimension_numbers = #tpu.dot_dimension_numbers<[1], [0], [0], [1], [0, 0, 1, 1], [], []>} : vector<128x256xbf16>, vector<256x128xbf16>, vector<128x128xf32> -> vector<128x128xf32>
    %25 = arith.addf %20, %24 : vector<128x128xf32>
    %c0_19 = arith.constant 0 : index
    %c0_20 = arith.constant 0 : index
    %26 = vector.load %arg6[%c0_19, %c0_20] : memref<1x128xf32, #tpu.memory_space<vmem>>, vector<1x128xf32>
    %27 = vector.broadcast %26 : vector<1x128xf32> to vector<128x128xf32>
    %28 = arith.addf %25, %27 : vector<128x128xf32>
    %cst_21 = arith.constant 0.000000e+00 : f32
    %29 = vector.broadcast %cst_21 : f32 to vector<128x128xf32>
    %30 = arith.maximumf %28, %29 : vector<128x128xf32>
    %31 = arith.truncf %30 : vector<128x128xf32> to vector<128x128xbf16>
    %c0_22 = arith.constant 0 : index
    %c0_23 = arith.constant 0 : index
    %32 = vector.load %arg7[%c0_22, %c0_23] : memref<16x128xbf16, #tpu.memory_space<vmem>>, vector<16x128xbf16>
    %cst_24 = arith.constant dense<0.000000e+00> : vector<16x128xf32>
    %33 = tpu.matmul %32, %31, %cst_24 {dimension_numbers = #tpu.dot_dimension_numbers<[1], [0], [0], [1], [0, 0, 1, 1], [], []>} : vector<16x128xbf16>, vector<128x128xbf16>, vector<16x128xf32> -> vector<16x128xf32>
    %34 = arith.truncf %33 : vector<16x128xf32> to vector<16x128xbf16>
    %c0_25 = arith.constant 0 : index
    %c0_26 = arith.constant 0 : index
    %35 = vector.load %arg8[%c0_25, %c0_26] : memref<128x128xbf16, #tpu.memory_space<vmem>>, vector<128x128xbf16>
    %cst_27 = arith.constant dense<0.000000e+00> : vector<16x128xf32>
    %36 = tpu.matmul %34, %35, %cst_27 {dimension_numbers = #tpu.dot_dimension_numbers<[1], [0], [0], [1], [0, 0, 1, 1], [], []>} : vector<16x128xbf16>, vector<128x128xbf16>, vector<16x128xf32> -> vector<16x128xf32>
    %c0_28 = arith.constant 0 : index
    %c0_29 = arith.constant 0 : index
    %37 = vector.load %arg9[%c0_28, %c0_29] : memref<1x128xf32, #tpu.memory_space<vmem>>, vector<1x128xf32>
    %38 = vector.broadcast %37 : vector<1x128xf32> to vector<16x128xf32>
    %39 = arith.addf %36, %38 : vector<16x128xf32>
    %c0_30 = arith.constant 0 : index
    %c0_31 = arith.constant 0 : index
    %40 = vector.load %arg10[%c0_30, %c0_31] : memref<16x128xf32, #tpu.memory_space<vmem>>, vector<16x128xf32>
    tpu.vector_store %arg10[%c0_30, %c0_31], %39 {strides = array<i32>} : memref<16x128xf32, #tpu.memory_space<vmem>>, vector<16x128xf32>,
    return
  }
  func.func @transform_0(%arg0: i32) -> (i32, i32) {
    %c0_i32 = arith.constant 0 : i32
    %c0_i32_0 = arith.constant 0 : i32
    return %arg0, %c0_i32 : i32, i32
  }
  func.func @transform_1(%arg0: i32) -> (i32, i32) {
    %c0_i32 = arith.constant 0 : i32
    %c0_i32_0 = arith.constant 0 : i32
    %c0_i32_1 = arith.constant 0 : i32
    return %c0_i32, %c0_i32_0 : i32, i32
  }
  func.func @transform_2(%arg0: i32) -> (i32, i32) {
    %c0_i32 = arith.constant 0 : i32
    %c0_i32_0 = arith.constant 0 : i32
    %c0_i32_1 = arith.constant 0 : i32
    return %c0_i32, %c0_i32_0 : i32, i32
  }
  func.func @transform_3(%arg0: i32) -> (i32, i32, i32) {
    %c0_i32 = arith.constant 0 : i32
    %c0_i32_0 = arith.constant 0 : i32
    %c0_i32_1 = arith.constant 0 : i32
    %c0_i32_2 = arith.constant 0 : i32
    return %c0_i32, %c0_i32_0, %c0_i32_1 : i32, i32, i32
  }
  func.func @transform_4(%arg0: i32) -> (i32, i32) {
    %c0_i32 = arith.constant 0 : i32
    %c0_i32_0 = arith.constant 0 : i32
    %c0_i32_1 = arith.constant 0 : i32
    return %c0_i32, %c0_i32_0 : i32, i32
  }
  func.func @transform_5(%arg0: i32) -> (i32, i32) {
    %c0_i32 = arith.constant 0 : i32
    %c0_i32_0 = arith.constant 0 : i32
    %c0_i32_1 = arith.constant 0 : i32
    return %c0_i32, %c0_i32_0 : i32, i32
  }
  func.func @transform_6(%arg0: i32) -> (i32, i32) {
    %c0_i32 = arith.constant 0 : i32
    %c0_i32_0 = arith.constant 0 : i32
    %c0_i32_1 = arith.constant 0 : i32
    return %c0_i32, %c0_i32_0 : i32, i32
  }
  func.func @transform_7(%arg0: i32) -> (i32, i32) {
    %c0_i32 = arith.constant 0 : i32
    %c0_i32_0 = arith.constant 0 : i32
    %c0_i32_1 = arith.constant 0 : i32
    return %c0_i32, %c0_i32_0 : i32, i32
  }
  func.func @transform_8(%arg0: i32) -> (i32, i32) {
    %c0_i32 = arith.constant 0 : i32
    %c0_i32_0 = arith.constant 0 : i32
    %c0_i32_1 = arith.constant 0 : i32
    return %c0_i32, %c0_i32_0 : i32, i32
  }
  func.func @transform_9(%arg0: i32) -> (i32, i32) {
    %c0_i32 = arith.constant 0 : i32
    %c0_i32_0 = arith.constant 0 : i32
    return %arg0, %c0_i32 : i32, i32
  }
}

</mosaic_0001>

<bundles_post_ra>
// kernel: _cnn_encoder_forward.1
= control target key start
LH: loop header
LB: loop body
LE: loop exit
PB: predicated region body
PF: predicated region fallthrough
CT: control target
= control target key end

     0   :  { %v2618_v0 = vmov 0   ;;  %vm312_vm0 = vcmask 523264   ;;  %vm2620_vm1 = vmmov 0   ;;  %s3432_s1 = inlined_call_operand.vmem [shape: bf16[192,128], index: 1, kind: input, shape index: {}]   ;;  %s3433_s0 = inlined_call_operand.vmem [shape: bf16[256,192], index: 0, kind: input, shape index: {}]   ;;  %s3434_s4 = inlined_call_operand.vmem [shape: bf16[128,384], index: 4, kind: input, shape index: {}]   ;;  %s3435_s2 = inlined_call_operand.vmem [shape: f32[1,128], index: 2, kind: input, shape index: {}]   ;;  %s3436_s3 = inlined_call_operand.vmem [shape: bf16[3,128,256], index: 3, kind: input, shape index: {}]   ;;  %s3437_s6 = inlined_call_operand.vmem [shape: bf16[16,128], index: 6, kind: input, shape index: {}]   ;;  %s3438_s7 = inlined_call_operand.vmem [shape: bf16[128,128], index: 7, kind: input, shape index: {}]   ;;  %s3439_s5 = inlined_call_operand.vmem [shape: f32[1,128], index: 5, kind: input, shape index: {}]   ;;  %s3440_s8 = inlined_call_operand.vmem [shape: f32[1,128], index: 8, kind: input, shape index: {}]   ;;  %s3441_s9 = inlined_call_operand.vmem [shape: f32[16,128], index: 9, kind: output, shape index: {}]  }
   0x1   :  { %361 = vmatprep.subr.bf16.mxu0 %v2618_v0  ;;  %v2445_v1 = vld [vmem:[%s3432_s1] sm:$0xff]   ;;  %762 = vmatprep.mubr.bf16.mxu1 %v2618_v0  ;;  %v2446_v2 = vld [vmem:[%s3432_s1 + $0x8] sm:$0xff]   ;;  %v2447_v3 = vld [vmem:[%s3432_s1 + $0x10] sm:$0xff]  }
   0x2   :  { %362 = vmatpush1.bf16.msra.mxu0 %v2445_v1  ;;  %v2448_v4 = vld [vmem:[%s3432_s1 + $0x18] sm:$0xff]   ;;  %v2459_v5 = vld [vmem:[%s3433_s0 + $0x4] ss:$8 sps:$4 sm:$0xff]   ;;  %v2451_v8 = vld [vmem:[%s3432_s1 + $0x30] sm:$0xff]  }
   0x3   :  { %363 = vmatprep.subr.bf16.mxu0 %v2618_v0  ;;  %v2449_v6 = vld [vmem:[%s3432_s1 + $0x20] sm:$0xff]   ;;  %1989 = vmatprep.mubr.msk.bf16.mxu0 %vm312_vm0, %v2459_v5  ;;  %v2450_v7 = vld [vmem:[%s3432_s1 + $0x28] sm:$0xff]   ;;  %v2452_v9 = vld [vmem:[%s3432_s1 + $0x38] sm:$0xff]  }
   0x4   :  { %v2453_v10 = vld [vmem:[%s3432_s1 + $0x40] sm:$0xff]   ;;  %v2454_v11 = vld [vmem:[%s3432_s1 + $0x48] sm:$0xff]   ;;  %v2455_v12 = vld [vmem:[%s3432_s1 + $0x50] sm:$0xff]  }
   0x5   :  { %v2456_v13 = vld [vmem:[%s3432_s1 + $0x58] sm:$0xff]   ;;  %v2505_v14 = vld [vmem:[%s3434_s4 + $0x4] ss:$12 sps:$4 sm:$0xff]   ;;  %v2507_v15 = vld [vmem:[%s3434_s4] ss:$12 sps:$4 sm:$0xff]  }
   0x6   :  { %364 = vmatpush1.bf16.msra.mxu0 %v2446_v2  ;;  %v2457_v16 = vld [vmem:[%s3433_s0] ss:$8 sps:$4 sm:$0xff]   ;;  %730 = vmatprep.subr.bf16.mxu1 %v2505_v14  ;;  %v2460_v18 = vld [vmem:[%s3433_s0 + $0x14] ss:$8 sps:$4 sm:$0xff]   ;;  %v2510_v19 = vld [vmem:[%s3434_s4 + $0x18] ss:$12 sps:$4 sm:$0xff]  }
   0x7   :  { %365 = vmatprep.subr.bf16.mxu0 %v2618_v0  ;;  %v2508_v17 = vld [vmem:[%s3434_s4 + $0x1c] ss:$12 sps:$4 sm:$0xff]   ;;  %731 = vmatpush1.bf16.msra.mxu1 %v2507_v15  ;;  %v2511_v20 = vld [vmem:[%s3434_s4 + $0x34] ss:$12 sps:$4 sm:$0xff]   ;;  %v2514_v22 = vld [vmem:[%s3434_s4 + $0x4c] ss:$12 sps:$4 sm:$0xff]  }
   0x8   :  { %732 = vmatprep.subr.bf16.mxu1 %v2508_v17  ;;  %v2513_v21 = vld [vmem:[%s3434_s4 + $0x30] ss:$12 sps:$4 sm:$0xff]   ;;  %v2516_v24 = vld [vmem:[%s3434_s4 + $0x48] ss:$12 sps:$4 sm:$0xff]   ;;  %v2463_v25 = vld [vmem:[%s3433_s0 + $0x24] ss:$8 sps:$4 sm:$0xff]  }
   0x9   :  { %v2462_v23 = vld [vmem:[%s3433_s0 + $0x10] ss:$8 sps:$4 sm:$0xff]   ;;  %v2519_v27 = vld [vmem:[%s3434_s4 + $0x60] ss:$12 sps:$4 sm:$0xff]   ;;  %v2520_v28 = vld [vmem:[%s3434_s4 + $0x7c] ss:$12 sps:$4 sm:$0xff]  }
   0xa   :  { %366 = vmatpush1.bf16.msra.mxu0 %v2447_v3  ;;  %v2517_v26 = vld [vmem:[%s3434_s4 + $0x64] ss:$12 sps:$4 sm:$0xff]   ;;  %v2465_v29 = vld [vmem:[%s3433_s0 + $0x20] ss:$8 sps:$4 sm:$0xff]   ;;  %v2466_v31 = vld [vmem:[%s3433_s0 + $0x34] ss:$8 sps:$4 sm:$0xff]  }
   0xb   :  { %367 = vmatprep.subr.bf16.mxu0 %v2618_v0  ;;  %733 = vmatpush1.bf16.msra.mxu1 %v2510_v19  ;;  %v2522_v30 = vld [vmem:[%s3434_s4 + $0x78] ss:$12 sps:$4 sm:$0xff]   ;;  %v2471_v34 = vld [vmem:[%s3433_s0 + $0x40] ss:$8 sps:$4 sm:$0xff]   ;;  %v2472_v35 = vld [vmem:[%s3433_s0 + $0x54] ss:$8 sps:$4 sm:$0xff]  }
   0xc   :  { %734 = vmatprep.subr.bf16.mxu1 %v2511_v20  ;;  %v2468_v32 = vld [vmem:[%s3433_s0 + $0x30] ss:$8 sps:$4 sm:$0xff]   ;;  %v2469_v33 = vld [vmem:[%s3433_s0 + $0x44] ss:$8 sps:$4 sm:$0xff]   ;;  %v2477_v38 = vld [vmem:[%s3433_s0 + $0x60] ss:$8 sps:$4 sm:$0xff]  }
   0xd   :  { %v2474_v36 = vld [vmem:[%s3433_s0 + $0x50] ss:$8 sps:$4 sm:$0xff]   ;;  %v2475_v37 = vld [vmem:[%s3433_s0 + $0x64] ss:$8 sps:$4 sm:$0xff]   ;;  %v2478_v39 = vld [vmem:[%s3433_s0 + $0x74] ss:$8 sps:$4 sm:$0xff]  }
   0xe   :  { %368 = vmatpush1.bf16.msra.mxu0 %v2448_v4  ;;  %v2480_v40 = vld [vmem:[%s3433_s0 + $0x70] ss:$8 sps:$4 sm:$0xff]   ;;  %v2481_v41 = vld [vmem:[%s3433_s0 + $0x84] ss:$8 sps:$4 sm:$0xff]   ;;  %v2483_v42 = vld [vmem:[%s3433_s0 + $0x80] ss:$8 sps:$4 sm:$0xff]  }
   0xf   :  { %369 = vmatprep.subr.bf16.mxu0 %v2618_v0  ;;  %735 = vmatpush1.bf16.msra.mxu1 %v2513_v21  ;;  %v2484_v43 = vld [vmem:[%s3433_s0 + $0x94] ss:$8 sps:$4 sm:$0xff]   ;;  %v2486_v44 = vld [vmem:[%s3433_s0 + $0x90] ss:$8 sps:$4 sm:$0xff]   ;;  %v2487_v45 = vld [vmem:[%s3433_s0 + $0xa4] ss:$8 sps:$4 sm:$0xff]  }
  0x10   :  { %736 = vmatprep.subr.bf16.mxu1 %v2514_v22  ;;  %v2489_v46 = vld [vmem:[%s3433_s0 + $0xa0] ss:$8 sps:$4 sm:$0xff]   ;;  %v2490_v47 = vld [vmem:[%s3433_s0 + $0xb4] ss:$8 sps:$4 sm:$0xff]   ;;  %v2492_v50 = vld [vmem:[%s3433_s0 + $0xb0] ss:$8 sps:$4 sm:$0xff]  }
  0x11   :  { %v2523_v48 = vld [vmem:[%s3434_s4 + $0x94] ss:$12 sps:$4 sm:$0xff]   ;;  %v2525_v49 = vld [vmem:[%s3434_s4 + $0x90] ss:$12 sps:$4 sm:$0xff]   ;;  %v2493_v51 = vld [vmem:[%s3433_s0 + $0xc4] ss:$8 sps:$4 sm:$0xff]  }
  0x12   :  { %370 = vmatpush1.bf16.msra.mxu0 %v2449_v6  ;;  %v2526_v52 = vld [vmem:[%s3434_s4 + $0xac] ss:$12 sps:$4 sm:$0xff]   ;;  %v2528_v53 = vld [vmem:[%s3434_s4 + $0xa8] ss:$12 sps:$4 sm:$0xff]   ;;  %v2886_v62 = vld [vmem:[%s3435_s2] ss:$0 sm:$0xff] }
  0x13   :  { %371 = vmatprep.subr.bf16.mxu0 %v2618_v0  ;;  %737 = vmatpush1.bf16.msra.mxu1 %v2516_v24  ;;  %v2495_v54 = vld [vmem:[%s3433_s0 + $0xc0] ss:$8 sps:$4 sm:$0xff]   ;;  %v2496_v55 = vld [vmem:[%s3433_s0 + $0xd4] ss:$8 sps:$4 sm:$0xff]   ;;  %v2498_v56 = vld [vmem:[%s3433_s0 + $0xd0] ss:$8 sps:$4 sm:$0xff]  }
  0x14   :  { %738 = vmatprep.subr.bf16.mxu1 %v2517_v26  ;;  %v2499_v57 = vld [vmem:[%s3433_s0 + $0xe4] ss:$8 sps:$4 sm:$0xff]   ;;  %v2501_v58 = vld [vmem:[%s3433_s0 + $0xe0] ss:$8 sps:$4 sm:$0xff]   ;;  %v2502_v59 = vld [vmem:[%s3433_s0 + $0xf4] ss:$8 sps:$4 sm:$0xff]  }
  0x15   :  { %v2504_v60 = vld [vmem:[%s3433_s0 + $0xf0] ss:$8 sps:$4 sm:$0xff]   ;;  %v2529_v61 = vld [vmem:[%s3434_s4 + $0x8] ss:$12 sps:$4 sm:$0xff]  }
  0x16   :  { %372 = vmatpush1.bf16.msra.mxu0 %v2450_v7  ;;  %v2532_v20 = vld [vmem:[%s3434_s4 + $0x50] ss:$12 sps:$4 sm:$0xff]  }
  0x17   :  { %373 = vmatprep.subr.bf16.mxu0 %v2618_v0  ;;  %739 = vmatpush1.bf16.msra.mxu1 %v2519_v27  ;;  %v2533_v27 = vld [vmem:[%s3434_s4 + $0x68] ss:$12 sps:$4 sm:$0xff]  }
  0x18   :  { %740 = vmatprep.subr.bf16.mxu1 %v2520_v28 }
  0x1a   :  { %374 = vmatpush1.bf16.msra.mxu0 %v2451_v8 }
  0x1b   :  { %375 = vmatprep.subr.bf16.mxu0 %v2618_v0  ;;  %741 = vmatpush1.bf16.msra.mxu1 %v2522_v30 }
  0x1c   :  { %742 = vmatprep.subr.bf16.mxu1 %v2523_v48 }
  0x1e   :  { %376 = vmatpush1.bf16.msra.mxu0 %v2452_v9  ;;  %v2530_v9 = vld [vmem:[%s3434_s4 + $0x20] ss:$12 sps:$4 sm:$0xff]  }
  0x1f   :  { %377 = vmatprep.subr.bf16.mxu0 %v2618_v0  ;;  %743 = vmatpush1.bf16.msra.mxu1 %v2525_v49 }
  0x20   :  { %744 = vmatprep.subr.bf16.mxu1 %v2526_v52 }
  0x22   :  { %378 = vmatpush1.bf16.msra.mxu0 %v2453_v10 }
  0x23   :  { %379 = vmatprep.subr.bf16.mxu0 %v2618_v0  ;;  %745 = vmatpush1.bf16.msra.mxu1 %v2528_v53 }
  0x24   :  { %2354 = vmatprep.subr.bf16.mxu1 %v2529_v61 }
  0x26   :  { %380 = vmatpush1.bf16.msra.mxu0 %v2454_v11 }
  0x27   :  { %381 = vmatprep.subr.bf16.mxu0 %v2618_v0 }
  0x2a   :  { %382 = vmatpush1.bf16.msra.mxu0 %v2455_v12 }
  0x2b   :  { %383 = vmatprep.subr.bf16.mxu0 %v2618_v0 }
  0x2e   :  { %384 = vmatpush1.bf16.msra.mxu0 %v2456_v13 }
  0x31   :  { %394 = vmatmul.mubr.bf16.vlgmr.msra.gmra.mrb[0].mxu0 %v2457_v16  ;;  %v2531_v16 = vld [vmem:[%s3434_s4 + $0x38] ss:$12 sps:$4 sm:$0xff]  }
  0x32   :  { %1990 = vmatprep.mubr.msk.bf16.mxu0 %vm312_vm0, %v2460_v18 }
  0x39   :  { %402 = vmatmul.mubr.bf16.gmra.mrb[4].mxu0 %v2462_v23 }
  0x3a   :  { %1991 = vmatprep.mubr.msk.bf16.mxu0 %vm312_vm0, %v2463_v25 }
  0x41   :  { %410 = vmatmul.mubr.bf16.gmra.mrb[8].mxu0 %v2465_v29 }
  0x42   :  { %1992 = vmatprep.mubr.msk.bf16.mxu0 %vm312_vm0, %v2466_v31  ;;  %v2534_v31 = vld [vmem:[%s3434_s4 + $0x80] ss:$12 sps:$4 sm:$0xff]  }
  0x49   :  { %418 = vmatmul.mubr.bf16.gmra.mrb[12].mxu0 %v2468_v32 }
  0x4a   :  { %1993 = vmatprep.mubr.msk.bf16.mxu0 %vm312_vm0, %v2469_v33 }
  0x51   :  { %426 = vmatmul.mubr.bf16.gmra.mrb[16].mxu0 %v2471_v34 }
  0x52   :  { %1994 = vmatprep.mubr.msk.bf16.mxu0 %vm312_vm0, %v2472_v35 }
  0x59   :  { %434 = vmatmul.mubr.bf16.gmra.mrb[20].mxu0 %v2474_v36 }
  0x5a   :  { %1995 = vmatprep.mubr.msk.bf16.mxu0 %vm312_vm0, %v2475_v37 }
  0x61   :  { %442 = vmatmul.mubr.bf16.gmra.mrb[24].mxu0 %v2477_v38  ;;  %v2535_v38 = vld [vmem:[%s3434_s4 + $0x98] ss:$12 sps:$4 sm:$0xff]  }
  0x62   :  { %1996 = vmatprep.mubr.msk.bf16.mxu0 %vm312_vm0, %v2478_v39 }
  0x69   :  { %450 = vmatmul.mubr.bf16.gmra.mrb[28].mxu0 %v2480_v40 }
  0x6a   :  { %1997 = vmatprep.mubr.msk.bf16.mxu0 %vm312_vm0, %v2481_v41 }
  0x71   :  { %458 = vmatmul.mubr.bf16.gmra.mrb[32].mxu0 %v2483_v42  ;;  %v2536_v42 = vld [vmem:[%s3434_s4 + $0xb0] ss:$12 sps:$4 sm:$0xff]  }
  0x72   :  { %1998 = vmatprep.mubr.msk.bf16.mxu0 %vm312_vm0, %v2484_v43 }
  0x79   :  { %466 = vmatmul.mubr.bf16.gmra.mrb[36].mxu0 %v2486_v44 }
  0x7a   :  { %1999 = vmatprep.mubr.msk.bf16.mxu0 %vm312_vm0, %v2487_v45 }
  0x81   :  { %474 = vmatmul.mubr.bf16.gmra.mrb[40].mxu0 %v2489_v46 }
  0x82   :  { %2000 = vmatprep.mubr.msk.bf16.mxu0 %vm312_vm0, %v2490_v47 }
  0x89   :  { %482 = vmatmul.mubr.bf16.gmra.mrb[44].mxu0 %v2492_v50 }
  0x8a   :  { %2001 = vmatprep.mubr.msk.bf16.mxu0 %vm312_vm0, %v2493_v51 }
  0x91   :  { %490 = vmatmul.mubr.bf16.gmra.mrb[48].mxu0 %v2495_v54 }
  0x92   :  { %2002 = vmatprep.mubr.msk.bf16.mxu0 %vm312_vm0, %v2496_v55 }
  0x99   :  { %498 = vmatmul.mubr.bf16.gmra.mrb[52].mxu0 %v2498_v56 }
  0x9a   :  { %2003 = vmatprep.mubr.msk.bf16.mxu0 %vm312_vm0, %v2499_v57 }
  0xa1   :  { %506 = vmatmul.mubr.bf16.gmra.mrb[56].mxu0 %v2501_v58 }
  0xa2   :  { %2004 = vmatprep.mubr.msk.bf16.mxu0 %vm312_vm0, %v2502_v59 }
  0xa9   :  { %514 = vmatmul.mubr.bf16.gmra.mrb[60].mxu0 %v2504_v60 }
 0x104   :  { %v395_v63 = vpop.f32.mrb[0].mxu0 }
 0x105   :  { %v396_v1 = vadd.f32 %v2886_v62, %v395_v63  ;;  %v397_v2 = vpop.f32.mrb[1].mxu0 }
 0x106   :  { %v398_v3 = vpop.f32.mrb[2].mxu0 }
 0x107   :  { %v399_v4 = vadd.f32 %v2886_v62, %v398_v3  ;;  %v400_v5 = vpop.f32.mrb[3].mxu0  ;;  %v522_v6 = vmax.f32 %v396_v1, 0.0 }
 0x109   :  { %v523_v7 = vmax.f32 %v399_v4, 0.0 }
 0x10b   :  { %v2890_v8 = vpack.c.bf16 %v523_v7, %v522_v6 }
 0x10c   :  { %v403_v10 = vpop.f32.mrb[4].mxu0 }
 0x10d   :  { %v404_v11 = vadd.f32 %v2886_v62, %v403_v10  ;;  %v405_v12 = vpop.f32.mrb[5].mxu0  ;;  %763 = vmatmul.mubr.bf16.vlgmr.msra.gmra.mrb[0].mxu1 %v2890_v8 }
 0x10e   :  { %v406_v13 = vpop.f32.mrb[6].mxu0  ;;  %772 = vmatprep.mubr.bf16.mxu1 %v2618_v0  ;;  %2355 = vmatpush3.bf16.msra.mxu1 %v2529_v61 }
 0x10f   :  { %v407_v14 = vadd.f32 %v2886_v62, %v406_v13  ;;  %v408_v15 = vpop.f32.mrb[7].mxu0  ;;  %2356 = vmatprep.subr.bf16.mxu1 %v2530_v9  ;;  %v524_v17 = vmax.f32 %v404_v11, 0.0 }
 0x111   :  { %v525_v18 = vmax.f32 %v407_v14, 0.0 }
 0x112   :  { %2357 = vmatpush3.bf16.msra.mxu1 %v2530_v9 }
 0x113   :  { %v2902_v19 = vpack.c.bf16 %v525_v18, %v524_v17  ;;  %2358 = vmatprep.subr.bf16.mxu1 %v2531_v16 }
 0x114   :  { %v411_v21 = vpop.f32.mrb[8].mxu0 }
 0x115   :  { %v412_v22 = vadd.f32 %v2886_v62, %v411_v21  ;;  %v413_v23 = vpop.f32.mrb[9].mxu0  ;;  %773 = vmatmul.mubr.bf16.gmra.mrb[4].mxu1 %v2902_v19 }
 0x116   :  { %v414_v24 = vpop.f32.mrb[10].mxu0  ;;  %782 = vmatprep.mubr.bf16.mxu1 %v2618_v0  ;;  %2359 = vmatpush3.bf16.msra.mxu1 %v2531_v16 }
 0x117   :  { %v415_v25 = vadd.f32 %v2886_v62, %v414_v24  ;;  %v416_v26 = vpop.f32.mrb[11].mxu0  ;;  %2360 = vmatprep.subr.bf16.mxu1 %v2532_v20  ;;  %v526_v28 = vmax.f32 %v412_v22, 0.0 }
 0x119   :  { %v527_v29 = vmax.f32 %v415_v25, 0.0 }
 0x11a   :  { %2361 = vmatpush3.bf16.msra.mxu1 %v2532_v20 }
 0x11b   :  { %v2914_v30 = vpack.c.bf16 %v527_v29, %v526_v28  ;;  %2362 = vmatprep.subr.bf16.mxu1 %v2533_v27 }
 0x11c   :  { %v419_v32 = vpop.f32.mrb[12].mxu0 }
 0x11d   :  { %v420_v33 = vadd.f32 %v2886_v62, %v419_v32  ;;  %v421_v34 = vpop.f32.mrb[13].mxu0  ;;  %783 = vmatmul.mubr.bf16.gmra.mrb[8].mxu1 %v2914_v30 }
 0x11e   :  { %v422_v35 = vpop.f32.mrb[14].mxu0  ;;  %792 = vmatprep.mubr.bf16.mxu1 %v2618_v0  ;;  %2363 = vmatpush3.bf16.msra.mxu1 %v2533_v27 }
 0x11f   :  { %v423_v36 = vadd.f32 %v2886_v62, %v422_v35  ;;  %v424_v37 = vpop.f32.mrb[15].mxu0  ;;  %2364 = vmatprep.subr.bf16.mxu1 %v2534_v31  ;;  %v528_v39 = vmax.f32 %v420_v33, 0.0 }
 0x121   :  { %v529_v40 = vmax.f32 %v423_v36, 0.0 }
 0x122   :  { %2365 = vmatpush3.bf16.msra.mxu1 %v2534_v31 }
 0x123   :  { %v2926_v41 = vpack.c.bf16 %v529_v40, %v528_v39  ;;  %2366 = vmatprep.subr.bf16.mxu1 %v2535_v38 }
 0x124   :  { %v427_v43 = vpop.f32.mrb[16].mxu0 }
 0x125   :  { %v428_v44 = vadd.f32 %v2886_v62, %v427_v43  ;;  %v429_v45 = vpop.f32.mrb[17].mxu0  ;;  %793 = vmatmul.mubr.bf16.gmra.mrb[12].mxu1 %v2926_v41 }
 0x126   :  { %v430_v46 = vpop.f32.mrb[18].mxu0  ;;  %802 = vmatprep.mubr.bf16.mxu1 %v2618_v0  ;;  %2367 = vmatpush3.bf16.msra.mxu1 %v2535_v38 }
 0x127   :  { %v431_v47 = vadd.f32 %v2886_v62, %v430_v46  ;;  %v432_v48 = vpop.f32.mrb[19].mxu0  ;;  %2368 = vmatprep.subr.bf16.mxu1 %v2536_v42  ;;  %v530_v49 = vmax.f32 %v428_v44, 0.0 }
 0x129   :  { %v531_v50 = vmax.f32 %v431_v47, 0.0 }
 0x12a   :  { %2369 = vmatpush3.bf16.msra.mxu1 %v2536_v42 }
 0x12b   :  { %v2935_v51 = vpack.c.bf16 %v531_v50, %v530_v49 }
 0x12c   :  { %v435_v52 = vpop.f32.mrb[20].mxu0 }
 0x12d   :  { %v436_v53 = vadd.f32 %v2886_v62, %v435_v52  ;;  %v437_v54 = vpop.f32.mrb[21].mxu0  ;;  %803 = vmatmul.mubr.bf16.gmra.mrb[16].mxu1 %v2935_v51 }
 0x12e   :  { %v438_v55 = vpop.f32.mrb[22].mxu0  ;;  %812 = vmatprep.mubr.bf16.mxu1 %v2618_v0 }
 0x12f   :  { %v439_v56 = vadd.f32 %v2886_v62, %v438_v55  ;;  %v440_v57 = vpop.f32.mrb[23].mxu0  ;;  %v532_v58 = vmax.f32 %v436_v53, 0.0 }
 0x131   :  { %v533_v59 = vmax.f32 %v439_v56, 0.0 }
 0x133   :  { %v2941_v60 = vpack.c.bf16 %v533_v59, %v532_v58 }
 0x134   :  { %v443_v61 = vpop.f32.mrb[24].mxu0 }
 0x135   :  { %v444_v63 = vadd.f32 %v2886_v62, %v443_v61  ;;  %v445_v1 = vpop.f32.mrb[25].mxu0  ;;  %813 = vmatmul.mubr.bf16.gmra.mrb[20].mxu1 %v2941_v60 }
 0x136   :  { %v446_v2 = vpop.f32.mrb[26].mxu0  ;;  %822 = vmatprep.mubr.bf16.mxu1 %v2618_v0 }
 0x137   :  { %v447_v3 = vadd.f32 %v2886_v62, %v446_v2  ;;  %v448_v4 = vpop.f32.mrb[27].mxu0  ;;  %v534_v5 = vmax.f32 %v444_v63, 0.0 }
 0x139   :  { %v535_v6 = vmax.f32 %v447_v3, 0.0 }
 0x13b   :  { %v2947_v7 = vpack.c.bf16 %v535_v6, %v534_v5 }
 0x13c   :  { %v451_v9 = vpop.f32.mrb[28].mxu0 }
 0x13d   :  { %v452_v10 = vadd.f32 %v2886_v62, %v451_v9  ;;  %v453_v11 = vpop.f32.mrb[29].mxu0  ;;  %823 = vmatmul.mubr.bf16.gmra.mrb[24].mxu1 %v2947_v7 }
 0x13e   :  { %v454_v12 = vpop.f32.mrb[30].mxu0  ;;  %832 = vmatprep.mubr.bf16.mxu1 %v2618_v0 }
 0x13f   :  { %v455_v13 = vadd.f32 %v2886_v62, %v454_v12  ;;  %v456_v14 = vpop.f32.mrb[31].mxu0  ;;  %v536_v15 = vmax.f32 %v452_v10, 0.0 }
 0x141   :  { %v537_v16 = vmax.f32 %v455_v13, 0.0 }
 0x143   :  { %v2953_v17 = vpack.c.bf16 %v537_v16, %v536_v15 }
 0x144   :  { %v459_v18 = vpop.f32.mrb[32].mxu0 }
 0x145   :  { %v460_v20 = vadd.f32 %v2886_v62, %v459_v18  ;;  %v461_v21 = vpop.f32.mrb[33].mxu0  ;;  %833 = vmatmul.mubr.bf16.gmra.mrb[28].mxu1 %v2953_v17 }
 0x146   :  { %v462_v22 = vpop.f32.mrb[34].mxu0  ;;  %842 = vmatprep.mubr.bf16.mxu1 %v2618_v0 }
 0x147   :  { %v463_v23 = vadd.f32 %v2886_v62, %v462_v22  ;;  %v464_v24 = vpop.f32.mrb[35].mxu0  ;;  %v538_v25 = vmax.f32 %v460_v20, 0.0 }
 0x149   :  { %v539_v26 = vmax.f32 %v463_v23, 0.0 }
 0x14b   :  { %v2959_v27 = vpack.c.bf16 %v539_v26, %v538_v25 }
 0x14c   :  { %v467_v28 = vpop.f32.mrb[36].mxu0 }
 0x14d   :  { %v468_v29 = vadd.f32 %v2886_v62, %v467_v28  ;;  %v469_v31 = vpop.f32.mrb[37].mxu0  ;;  %843 = vmatmul.mubr.bf16.gmra.mrb[32].mxu1 %v2959_v27 }
 0x14e   :  { %v470_v32 = vpop.f32.mrb[38].mxu0  ;;  %852 = vmatprep.mubr.bf16.mxu1 %v2618_v0 }
 0x14f   :  { %v471_v33 = vadd.f32 %v2886_v62, %v470_v32  ;;  %v472_v34 = vpop.f32.mrb[39].mxu0  ;;  %v540_v35 = vmax.f32 %v468_v29, 0.0 }
 0x151   :  { %v541_v36 = vmax.f32 %v471_v33, 0.0 }
 0x153   :  { %v2965_v37 = vpack.c.bf16 %v541_v36, %v540_v35 }
 0x154   :  { %v475_v38 = vpop.f32.mrb[40].mxu0 }
 0x155   :  { %v476_v39 = vadd.f32 %v2886_v62, %v475_v38  ;;  %v477_v40 = vpop.f32.mrb[41].mxu0  ;;  %853 = vmatmul.mubr.bf16.gmra.mrb[36].mxu1 %v2965_v37 }
 0x156   :  { %v478_v42 = vpop.f32.mrb[42].mxu0  ;;  %862 = vmatprep.mubr.bf16.mxu1 %v2618_v0 }
 0x157   :  { %v479_v43 = vadd.f32 %v2886_v62, %v478_v42  ;;  %v480_v44 = vpop.f32.mrb[43].mxu0  ;;  %v542_v45 = vmax.f32 %v476_v39, 0.0 }
 0x159   :  { %v543_v46 = vmax.f32 %v479_v43, 0.0 }
 0x15b   :  { %v2971_v47 = vpack.c.bf16 %v543_v46, %v542_v45 }
 0x15c   :  { %v483_v48 = vpop.f32.mrb[44].mxu0 }
 0x15d   :  { %v484_v49 = vadd.f32 %v2886_v62, %v483_v48  ;;  %v485_v50 = vpop.f32.mrb[45].mxu0  ;;  %863 = vmatmul.mubr.bf16.gmra.mrb[40].mxu1 %v2971_v47 }
 0x15e   :  { %v486_v52 = vpop.f32.mrb[46].mxu0  ;;  %872 = vmatprep.mubr.bf16.mxu1 %v2618_v0 }
 0x15f   :  { %v487_v53 = vadd.f32 %v2886_v62, %v486_v52  ;;  %v488_v54 = vpop.f32.mrb[47].mxu0  ;;  %v544_v55 = vmax.f32 %v484_v49, 0.0 }
 0x161   :  { %v545_v56 = vmax.f32 %v487_v53, 0.0 }
 0x163   :  { %v565_v57 = vpack.c.bf16 %v545_v56, %v544_v55 }
 0x164   :  { %v491_v58 = vpop.f32.mrb[48].mxu0 }
 0x165   :  { %v492_v59 = vadd.f32 %v2886_v62, %v491_v58  ;;  %v493_v61 = vpop.f32.mrb[49].mxu0  ;;  %873 = vmatmul.mubr.bf16.gmra.mrb[44].mxu1 %v565_v57 }
 0x166   :  { %v494_v63 = vpop.f32.mrb[50].mxu0  ;;  %882 = vmatprep.mubr.bf16.mxu1 %v2618_v0 }
 0x167   :  { %v495_v1 = vadd.f32 %v2886_v62, %v494_v63  ;;  %v496_v2 = vpop.f32.mrb[51].mxu0  ;;  %v546_v3 = vmax.f32 %v492_v59, 0.0 }
 0x169   :  { %v547_v4 = vmax.f32 %v495_v1, 0.0 }
 0x16b   :  { %v566_v5 = vpack.c.bf16 %v547_v4, %v546_v3 }
 0x16c   :  { %v499_v6 = vpop.f32.mrb[52].mxu0 }
 0x16d   :  { %v500_v9 = vadd.f32 %v2886_v62, %v499_v6  ;;  %v501_v10 = vpop.f32.mrb[53].mxu0  ;;  %883 = vmatmul.mubr.bf16.gmra.mrb[48].mxu1 %v566_v5 }
 0x16e   :  { %v502_v11 = vpop.f32.mrb[54].mxu0  ;;  %892 = vmatprep.mubr.bf16.mxu1 %v2618_v0 }
 0x16f   :  { %v503_v12 = vadd.f32 %v2886_v62, %v502_v11  ;;  %v504_v13 = vpop.f32.mrb[55].mxu0  ;;  %v548_v14 = vmax.f32 %v500_v9, 0.0 }
 0x171   :  { %v549_v15 = vmax.f32 %v503_v12, 0.0 }
 0x173   :  { %v567_v16 = vpack.c.bf16 %v549_v15, %v548_v14 }
 0x174   :  { %v507_v18 = vpop.f32.mrb[56].mxu0 }
 0x175   :  { %v508_v20 = vadd.f32 %v2886_v62, %v507_v18  ;;  %v509_v21 = vpop.f32.mrb[57].mxu0  ;;  %893 = vmatmul.mubr.bf16.gmra.mrb[52].mxu1 %v567_v16 }
 0x176   :  { %v510_v22 = vpop.f32.mrb[58].mxu0  ;;  %902 = vmatprep.mubr.bf16.mxu1 %v2618_v0 }
 0x177   :  { %v511_v23 = vadd.f32 %v2886_v62, %v510_v22  ;;  %v512_v24 = vpop.f32.mrb[59].mxu0  ;;  %v550_v25 = vmax.f32 %v508_v20, 0.0 }
 0x179   :  { %v551_v26 = vmax.f32 %v511_v23, 0.0 }
 0x17b   :  { %v568_v28 = vpack.c.bf16 %v551_v26, %v550_v25 }
 0x17c   :  { %v515_v29 = vpop.f32.mrb[60].mxu0 }
 0x17d   :  { %v516_v31 = vadd.f32 %v2886_v62, %v515_v29  ;;  %v517_v32 = vpop.f32.mrb[61].mxu0  ;;  %903 = vmatmul.mubr.bf16.gmra.mrb[56].mxu1 %v568_v28 }
 0x17e   :  { %v518_v33 = vpop.f32.mrb[62].mxu0  ;;  %912 = vmatprep.mubr.bf16.mxu1 %v2618_v0 }
 0x17f   :  { %v519_v34 = vadd.f32 %v2886_v62, %v518_v33  ;;  %v520_v35 = vpop.f32.mrb[63].mxu0  ;;  %v552_v36 = vmax.f32 %v516_v31, 0.0  ;;  %v2539_v62 = vld [vmem:[%s3436_s3 + $0x84] ss:$8 sps:$4 sm:$0xff]  }
 0x180   :  { %1277 = vmatprep.mubr.bf16.mxu0 %v2539_v62 }
 0x181   :  { %v553_v38 = vmax.f32 %v519_v34, 0.0 }
 0x183   :  { %v569_v39 = vpack.c.bf16 %v553_v38, %v552_v36 }
 0x185   :  { %913 = vmatmul.mubr.bf16.gmra.mrb[60].mxu1 %v569_v39 }
 0x186   :  { %2370 = vmatprep.mubr.bf16.mxu1 %v2890_v8 }
 0x18d   :  { %2371 = vmatmul.mubr.bf16.vlgmr.msra.gmra.mrb[64].mxu1 %v2902_v19 }
 0x18e   :  { %2374 = vmatprep.mubr.bf16.mxu1 %v2914_v30 }
 0x195   :  { %2375 = vmatmul.mubr.bf16.gmra.mrb[68].mxu1 %v2926_v41 }
 0x196   :  { %2378 = vmatprep.mubr.bf16.mxu1 %v2935_v51 }
 0x19d   :  { %2379 = vmatmul.mubr.bf16.gmra.mrb[72].mxu1 %v2941_v60  ;;  %v2563_v60 = vld [vmem:[%s3436_s3 + $0x4] ss:$8 sps:$4 sm:$0xff]  }
 0x19e   :  { %2382 = vmatprep.mubr.bf16.mxu1 %v2947_v7 }
 0x1a5   :  { %2383 = vmatmul.mubr.bf16.gmra.mrb[76].mxu1 %v2953_v17 }
 0x1a6   :  { %2386 = vmatprep.mubr.bf16.mxu1 %v2959_v27 }
 0x1ad   :  { %2387 = vmatmul.mubr.bf16.gmra.mrb[80].mxu1 %v2965_v37 }
 0x1ae   :  { %2390 = vmatprep.mubr.bf16.mxu1 %v2971_v47 }
 0x1b5   :  { %2391 = vmatmul.mubr.bf16.gmra.mrb[84].mxu1 %v565_v57 }
 0x1b6   :  { %2394 = vmatprep.mubr.bf16.mxu1 %v566_v5 }
 0x1bd   :  { %2395 = vmatmul.mubr.bf16.gmra.mrb[88].mxu1 %v567_v16 }
 0x1be   :  { %2398 = vmatprep.mubr.bf16.mxu1 %v568_v28 }
 0x1c5   :  { %2399 = vmatmul.mubr.bf16.gmra.mrb[92].mxu1 %v569_v39 }
 0x1c6   :  { %1454 = vmatprep.mubr.bf16.mxu1 %v2563_v60 }
 0x1e0   :  { %v764_v0 = vpop.f32.mrb[0].mxu1 }
 0x1e1   :  { %v766_v8 = vpop.f32.mrb[1].mxu1 }
 0x1e2   :  { %v768_v19 = vpop.f32.mrb[2].mxu1 }
 0x1e3   :  { %v1084_v30 = vpack.c.bf16 %v768_v19, %v764_v0  ;;  %v770_v41 = vpop.f32.mrb[3].mxu1 }
 0x1e4   :  { %v1085_v51 = vpack.c.bf16 %v770_v41, %v766_v8 }
 0x1e8   :  { %v774_v7 = vpop.f32.mrb[4].mxu1 }
 0x1e9   :  { %v776_v17 = vpop.f32.mrb[5].mxu1 }
 0x1ea   :  { %v778_v27 = vpop.f32.mrb[6].mxu1 }
 0x1eb   :  { %v1087_v37 = vpack.c.bf16 %v778_v27, %v774_v7  ;;  %v780_v40 = vpop.f32.mrb[7].mxu1 }
 0x1ec   :  { %v1088_v42 = vpack.c.bf16 %v780_v40, %v776_v17 }
 0x1f0   :  { %v3006_v43 = vpop.f32.mrb[8].mxu1 }
 0x1f1   :  { %v3008_v44 = vpop.f32.mrb[9].mxu1 }
 0x1f2   :  { %v788_v45 = vpop.f32.mrb[10].mxu1 }
 0x1f3   :  { %v1090_v46 = vpack.c.bf16 %v788_v45, %v3006_v43  ;;  %v790_v47 = vpop.f32.mrb[11].mxu1 }
 0x1f4   :  { %v1091_v48 = vpack.c.bf16 %v790_v47, %v3008_v44 }
 0x1f8   :  { %v3012_v49 = vpop.f32.mrb[12].mxu1 }
 0x1f9   :  { %v3014_v50 = vpop.f32.mrb[13].mxu1 }
 0x1fa   :  { %v3016_v52 = vpop.f32.mrb[14].mxu1 }
 0x1fb   :  { %v1093_v53 = vpack.c.bf16 %v3016_v52, %v3012_v49  ;;  %v3020_v54 = vpop.f32.mrb[15].mxu1 }
 0x1fc   :  { %v1094_v55 = vpack.c.bf16 %v3020_v54, %v3014_v50 }
 0x200   :  { %v3024_v56 = vpop.f32.mrb[16].mxu1 }
 0x201   :  { %v3026_v57 = vpop.f32.mrb[17].mxu1 }
 0x202   :  { %v3028_v58 = vpop.f32.mrb[18].mxu1 }
 0x203   :  { %v1096_v59 = vpack.c.bf16 %v3028_v58, %v3024_v56  ;;  %v3032_v61 = vpop.f32.mrb[19].mxu1 }
 0x204   :  { %v1097_v63 = vpack.c.bf16 %v3032_v61, %v3026_v57 }
 0x208   :  { %v3036_v1 = vpop.f32.mrb[20].mxu1 }
 0x209   :  { %v3038_v2 = vpop.f32.mrb[21].mxu1 }
 0x20a   :  { %v3040_v3 = vpop.f32.mrb[22].mxu1 }
 0x20b   :  { %v1099_v4 = vpack.c.bf16 %v3040_v3, %v3036_v1  ;;  %v3044_v5 = vpop.f32.mrb[23].mxu1  ;;  %v2561_v3 = vld [vmem:[%s3436_s3] ss:$8 sps:$4 sm:$0xff]  }
 0x20c   :  { %v1100_v6 = vpack.c.bf16 %v3044_v5, %v3038_v2  ;;  %v2567_v5 = vld [vmem:[%s3436_s3 + $0x14] ss:$8 sps:$4 sm:$0xff]  }
 0x210   :  { %v3048_v9 = vpop.f32.mrb[24].mxu1 }
 0x211   :  { %v3050_v10 = vpop.f32.mrb[25].mxu1 }
 0x212   :  { %v3052_v11 = vpop.f32.mrb[26].mxu1 }
 0x213   :  { %v1102_v12 = vpack.c.bf16 %v3052_v11, %v3048_v9  ;;  %v3056_v13 = vpop.f32.mrb[27].mxu1 }
 0x214   :  { %v1103_v14 = vpack.c.bf16 %v3056_v13, %v3050_v10 }
 0x218   :  { %v3060_v15 = vpop.f32.mrb[28].mxu1 }
 0x219   :  { %v3062_v16 = vpop.f32.mrb[29].mxu1 }
 0x21a   :  { %v3064_v18 = vpop.f32.mrb[30].mxu1 }
 0x21b   :  { %v1105_v20 = vpack.c.bf16 %v3064_v18, %v3060_v15  ;;  %v3068_v21 = vpop.f32.mrb[31].mxu1  ;;  %v2569_v15 = vld [vmem:[%s3436_s3 + $0x10] ss:$8 sps:$4 sm:$0xff]   ;;  %v2572_v18 = vld [vmem:[%s3436_s3 + $0x24] ss:$8 sps:$4 sm:$0xff]  }
 0x21c   :  { %v1106_v22 = vpack.c.bf16 %v3068_v21, %v3062_v16  ;;  %v2542_v16 = vld [vmem:[%s3436_s3 + $0x90] ss:$8 sps:$4 sm:$0xff]  }
 0x220   :  { %v844_v23 = vpop.f32.mrb[32].mxu1 }
 0x221   :  { %v846_v24 = vpop.f32.mrb[33].mxu1 }
 0x222   :  { %v848_v25 = vpop.f32.mrb[34].mxu1 }
 0x223   :  { %v1108_v26 = vpack.c.bf16 %v848_v25, %v844_v23  ;;  %v850_v28 = vpop.f32.mrb[35].mxu1 }
 0x224   :  { %v1109_v29 = vpack.c.bf16 %v850_v28, %v846_v24  ;;  %v2575_v28 = vld [vmem:[%s3436_s3 + $0x20] ss:$8 sps:$4 sm:$0xff]  }
 0x225   :  { %2208 = vmatprep.subr.bf16.mxu1 %v1108_v26 }
 0x226   :  { %2144 = vmatprep.subr.bf16.mxu0 %v1109_v29  ;;  %2209 = vmatpush3.bf16.msra.mxu1 %v1084_v30  ;;  %v2545_v29 = vld [vmem:[%s3436_s3 + $0xa0] ss:$8 sps:$4 sm:$0xff]  }
 0x227   :  { %2145 = vmatpush3.bf16.msra.mxu0 %v1085_v51 }
 0x228   :  { %v854_v31 = vpop.f32.mrb[36].mxu1 }
 0x229   :  { %v856_v32 = vpop.f32.mrb[37].mxu1 }
 0x22a   :  { %v858_v33 = vpop.f32.mrb[38].mxu1 }
 0x22b   :  { %v1111_v34 = vpack.c.bf16 %v858_v33, %v854_v31  ;;  %v860_v35 = vpop.f32.mrb[39].mxu1  ;;  %v2578_v31 = vld [vmem:[%s3436_s3 + $0x34] ss:$8 sps:$4 sm:$0xff]  }
 0x22c   :  { %v1112_v36 = vpack.c.bf16 %v860_v35, %v856_v32  ;;  %v2546_v32 = vld [vmem:[%s3436_s3 + $0xb4] ss:$8 sps:$4 sm:$0xff]  }
 0x22d   :  { %2210 = vmatprep.subr.bf16.mxu1 %v1111_v34 }
 0x22e   :  { %2146 = vmatprep.subr.bf16.mxu0 %v1112_v36  ;;  %2211 = vmatpush3.bf16.msra.mxu1 %v1087_v37 }
 0x22f   :  { %2147 = vmatpush3.bf16.msra.mxu0 %v1088_v42 }
 0x230   :  { %v864_v38 = vpop.f32.mrb[40].mxu1 }
 0x231   :  { %v866_v39 = vpop.f32.mrb[41].mxu1 }
 0x232   :  { %v868_v0 = vpop.f32.mrb[42].mxu1 }
 0x233   :  { %v1114_v62 = vpack.c.bf16 %v868_v0, %v864_v38  ;;  %v870_v8 = vpop.f32.mrb[43].mxu1  ;;  %v2581_v0 = vld [vmem:[%s3436_s3 + $0x30] ss:$8 sps:$4 sm:$0xff]  }
 0x234   :  { %v1115_v19 = vpack.c.bf16 %v870_v8, %v866_v39  ;;  %v2584_v8 = vld [vmem:[%s3436_s3 + $0x44] ss:$8 sps:$4 sm:$0xff]  }
 0x235   :  { %2212 = vmatprep.subr.bf16.mxu1 %v1114_v62  ;;  %v2548_v62 = vld [vmem:[%s3436_s3 + $0xb0] ss:$8 sps:$4 sm:$0xff]  }
 0x236   :  { %2148 = vmatprep.subr.bf16.mxu0 %v1115_v19  ;;  %2213 = vmatpush3.bf16.msra.mxu1 %v1090_v46  ;;  %v2549_v19 = vld [vmem:[%s3436_s3 + $0xc4] ss:$8 sps:$4 sm:$0xff]  }
 0x237   :  { %2149 = vmatpush3.bf16.msra.mxu0 %v1091_v48 }
 0x238   :  { %v874_v30 = vpop.f32.mrb[44].mxu1 }
 0x239   :  { %v876_v41 = vpop.f32.mrb[45].mxu1 }
 0x23a   :  { %v878_v51 = vpop.f32.mrb[46].mxu1 }
 0x23b   :  { %v1117_v60 = vpack.c.bf16 %v878_v51, %v874_v30  ;;  %v880_v7 = vpop.f32.mrb[47].mxu1 }
 0x23c   :  { %v1118_v17 = vpack.c.bf16 %v880_v7, %v876_v41 }
 0x23d   :  { %2214 = vmatprep.subr.bf16.mxu1 %v1117_v60 }
 0x23e   :  { %2150 = vmatprep.subr.bf16.mxu0 %v1118_v17  ;;  %2215 = vmatpush3.bf16.msra.mxu1 %v1093_v53 }
 0x23f   :  { %2151 = vmatpush3.bf16.msra.mxu0 %v1094_v55 }
 0x240   :  { %v884_v27 = vpop.f32.mrb[48].mxu1 }
 0x241   :  { %v886_v37 = vpop.f32.mrb[49].mxu1 }
 0x242   :  { %v888_v40 = vpop.f32.mrb[50].mxu1 }
 0x243   :  { %v1120_v42 = vpack.c.bf16 %v888_v40, %v884_v27  ;;  %v890_v43 = vpop.f32.mrb[51].mxu1  ;;  %v2587_v27 = vld [vmem:[%s3436_s3 + $0x40] ss:$8 sps:$4 sm:$0xff]   ;;  %v2590_v40 = vld [vmem:[%s3436_s3 + $0x54] ss:$8 sps:$4 sm:$0xff]  }
 0x244   :  { %v1121_v44 = vpack.c.bf16 %v890_v43, %v886_v37  ;;  %v2551_v37 = vld [vmem:[%s3436_s3 + $0xc0] ss:$8 sps:$4 sm:$0xff]  }
 0x245   :  { %2216 = vmatprep.subr.bf16.mxu1 %v1120_v42  ;;  %v2552_v42 = vld [vmem:[%s3436_s3 + $0xd4] ss:$8 sps:$4 sm:$0xff]  }
 0x246   :  { %2152 = vmatprep.subr.bf16.mxu0 %v1121_v44  ;;  %2217 = vmatpush3.bf16.msra.mxu1 %v1096_v59 }
 0x247   :  { %2153 = vmatpush3.bf16.msra.mxu0 %v1097_v63 }
 0x248   :  { %v894_v45 = vpop.f32.mrb[52].mxu1 }
 0x249   :  { %v896_v46 = vpop.f32.mrb[53].mxu1 }
 0x24a   :  { %v898_v47 = vpop.f32.mrb[54].mxu1 }
 0x24b   :  { %v1123_v48 = vpack.c.bf16 %v898_v47, %v894_v45  ;;  %v900_v49 = vpop.f32.mrb[55].mxu1 }
 0x24c   :  { %v1124_v50 = vpack.c.bf16 %v900_v49, %v896_v46  ;;  %v2593_v49 = vld [vmem:[%s3436_s3 + $0x50] ss:$8 sps:$4 sm:$0xff]  }
 0x24d   :  { %2218 = vmatprep.subr.bf16.mxu1 %v1123_v48 }
 0x24e   :  { %2154 = vmatprep.subr.bf16.mxu0 %v1124_v50  ;;  %2219 = vmatpush3.bf16.msra.mxu1 %v1099_v4  ;;  %v2537_v4 = vld [vmem:[%s3436_s3 + $0x80] ss:$8 sps:$4 sm:$0xff]   ;;  %v2554_v50 = vld [vmem:[%s3436_s3 + $0xd0] ss:$8 sps:$4 sm:$0xff]  }
 0x24f   :  { %2155 = vmatpush3.bf16.msra.mxu0 %v1100_v6  ;;  %v2540_v6 = vld [vmem:[%s3436_s3 + $0x94] ss:$8 sps:$4 sm:$0xff]  }
 0x250   :  { %v904_v52 = vpop.f32.mrb[56].mxu1 }
 0x251   :  { %v906_v53 = vpop.f32.mrb[57].mxu1 }
 0x252   :  { %v908_v54 = vpop.f32.mrb[58].mxu1 }
 0x253   :  { %v1126_v55 = vpack.c.bf16 %v908_v54, %v904_v52  ;;  %v910_v56 = vpop.f32.mrb[59].mxu1  ;;  %v2596_v52 = vld [vmem:[%s3436_s3 + $0x64] ss:$8 sps:$4 sm:$0xff]  }
 0x254   :  { %v1127_v57 = vpack.c.bf16 %v910_v56, %v906_v53  ;;  %v2555_v53 = vld [vmem:[%s3436_s3 + $0xe4] ss:$8 sps:$4 sm:$0xff]  }
 0x255   :  { %2220 = vmatprep.subr.bf16.mxu1 %v1126_v55 }
 0x256   :  { %2156 = vmatprep.subr.bf16.mxu0 %v1127_v57  ;;  %2221 = vmatpush3.bf16.msra.mxu1 %v1102_v12 }
 0x257   :  { %2157 = vmatpush3.bf16.msra.mxu0 %v1103_v14 }
 0x258   :  { %v914_v58 = vpop.f32.mrb[60].mxu1 }
 0x259   :  { %v916_v59 = vpop.f32.mrb[61].mxu1 }
 0x25a   :  { %v918_v61 = vpop.f32.mrb[62].mxu1 }
 0x25b   :  { %v1129_v63 = vpack.c.bf16 %v918_v61, %v914_v58  ;;  %v920_v1 = vpop.f32.mrb[63].mxu1  ;;  %v2599_v61 = vld [vmem:[%s3436_s3 + $0x60] ss:$8 sps:$4 sm:$0xff]  }
 0x25c   :  { %v1130_v2 = vpack.c.bf16 %v920_v1, %v916_v59  ;;  %v2602_v1 = vld [vmem:[%s3436_s3 + $0x74] ss:$8 sps:$4 sm:$0xff]  }
 0x25d   :  { %2222 = vmatprep.subr.bf16.mxu1 %v1129_v63  ;;  %v2557_v63 = vld [vmem:[%s3436_s3 + $0xe0] ss:$8 sps:$4 sm:$0xff]  }
 0x25e   :  { %2158 = vmatprep.subr.bf16.mxu0 %v1130_v2  ;;  %2223 = vmatpush3.bf16.msra.mxu1 %v1105_v20  ;;  %v2543_v20 = vld [vmem:[%s3436_s3 + $0xa4] ss:$8 sps:$4 sm:$0xff]   ;;  %v2558_v2 = vld [vmem:[%s3436_s3 + $0xf4] ss:$8 sps:$4 sm:$0xff]  }
 0x25f   :  { %2159 = vmatpush3.bf16.msra.mxu0 %v1106_v22 }
 0x260   :  { %v3114_v9 = vpop.f32.mrb[64].mxu1 }
 0x261   :  { %v3116_v10 = vpop.f32.mrb[65].mxu1  ;;  %1455 = vmatmul.mubr.bf16.vlgmr.msra.gmra.mrb[96].mxu1 %v2561_v3 }
 0x262   :  { %v3118_v11 = vpop.f32.mrb[66].mxu1  ;;  %1278 = vmatmul.mubr.bf16.vlgmr.msra.gmra.mrb[64].mxu0 %v2537_v4  ;;  %1462 = vmatprep.mubr.bf16.mxu1 %v2567_v5 }
 0x263   :  { %v1089_v12 = vpack.c.bf16 %v3118_v11, %v3114_v9  ;;  %v3122_v13 = vpop.f32.mrb[67].mxu1  ;;  %1285 = vmatprep.mubr.bf16.mxu0 %v2540_v6  ;;  %v2605_v11 = vld [vmem:[%s3436_s3 + $0x70] ss:$8 sps:$4 sm:$0xff]  }
 0x264   :  { %v1086_v14 = vpack.c.bf16 %v3122_v13, %v3116_v10  ;;  %v2566_v13 = vld [vmem:[%s3436_s3 + $0x104] ss:$8 sps:$4 sm:$0xff]  }
 0x268   :  { %v3138_v21 = vpop.f32.mrb[68].mxu1 }
 0x269   :  { %v3140_v22 = vpop.f32.mrb[69].mxu1  ;;  %1463 = vmatmul.mubr.bf16.gmra.mrb[100].mxu1 %v2569_v15 }
 0x26a   :  { %v3142_v23 = vpop.f32.mrb[70].mxu1  ;;  %1286 = vmatmul.mubr.bf16.gmra.mrb[68].mxu0 %v2542_v16  ;;  %1470 = vmatprep.mubr.bf16.mxu1 %v2572_v18 }
 0x26b   :  { %v1095_v24 = vpack.c.bf16 %v3142_v23, %v3138_v21  ;;  %v3146_v25 = vpop.f32.mrb[71].mxu1  ;;  %1293 = vmatprep.mubr.bf16.mxu0 %v2543_v20  ;;  %v2570_v23 = vld [vmem:[%s3436_s3 + $0x114] ss:$8 sps:$4 sm:$0xff]  }
 0x26c   :  { %v1092_v26 = vpack.c.bf16 %v3146_v25, %v3140_v22  ;;  %v2564_v22 = vld [vmem:[%s3436_s3 + $0x100] ss:$8 sps:$4 sm:$0xff]   ;;  %v2576_v25 = vld [vmem:[%s3436_s3 + $0x124] ss:$8 sps:$4 sm:$0xff]  }
 0x270   :  { %v3162_v33 = vpop.f32.mrb[72].mxu1 }
 0x271   :  { %v3164_v34 = vpop.f32.mrb[73].mxu1  ;;  %1471 = vmatmul.mubr.bf16.gmra.mrb[104].mxu1 %v2575_v28  ;;  %v2582_v28 = vld [vmem:[%s3436_s3 + $0x134] ss:$8 sps:$4 sm:$0xff]  }
 0x272   :  { %v3166_v35 = vpop.f32.mrb[74].mxu1  ;;  %1294 = vmatmul.mubr.bf16.gmra.mrb[72].mxu0 %v2545_v29  ;;  %1478 = vmatprep.mubr.bf16.mxu1 %v2578_v31  ;;  %v2586_v29 = vld [vmem:[%s3436_s3 + $0x130] ss:$8 sps:$4 sm:$0xff]   ;;  %v2588_v31 = vld [vmem:[%s3436_s3 + $0x144] ss:$8 sps:$4 sm:$0xff]  }
 0x273   :  { %v1101_v36 = vpack.c.bf16 %v3166_v35, %v3162_v33  ;;  %v3170_v38 = vpop.f32.mrb[75].mxu1  ;;  %1301 = vmatprep.mubr.bf16.mxu0 %v2546_v32  ;;  %v2592_v32 = vld [vmem:[%s3436_s3 + $0x140] ss:$8 sps:$4 sm:$0xff]   ;;  %v2594_v33 = vld [vmem:[%s3436_s3 + $0x154] ss:$8 sps:$4 sm:$0xff]  }
 0x274   :  { %v1098_v39 = vpack.c.bf16 %v3170_v38, %v3164_v34  ;;  %v2598_v34 = vld [vmem:[%s3436_s3 + $0x150] ss:$8 sps:$4 sm:$0xff]   ;;  %v2600_v35 = vld [vmem:[%s3436_s3 + $0x164] ss:$8 sps:$4 sm:$0xff]   ;;  %v2606_v38 = vld [vmem:[%s3436_s3 + $0x174] ss:$8 sps:$4 sm:$0xff]  }
 0x278   :  { %v3186_v30 = vpop.f32.mrb[76].mxu1 }
 0x279   :  { %v3188_v41 = vpop.f32.mrb[77].mxu1  ;;  %1479 = vmatmul.mubr.bf16.gmra.mrb[108].mxu1 %v2581_v0  ;;  %v2619_v0 = vmov 0.0  }
 0x27a   :  { %v3190_v51 = vpop.f32.mrb[78].mxu1  ;;  %1302 = vmatmul.mubr.bf16.gmra.mrb[76].mxu0 %v2548_v62  ;;  %1486 = vmatprep.mubr.bf16.mxu1 %v2584_v8 }
 0x27b   :  { %v1107_v60 = vpack.c.bf16 %v3190_v51, %v3186_v30  ;;  %v3194_v7 = vpop.f32.mrb[79].mxu1  ;;  %1309 = vmatprep.mubr.bf16.mxu0 %v2549_v19  ;;  %2402 = vmatprep.subr.bf16.mxu1 %v2619_v0 }
 0x27c   :  { %v1104_v17 = vpack.c.bf16 %v3194_v7, %v3188_v41 }
 0x280   :  { %v2388_v43 = vpop.f32.mrb[80].mxu1 }
 0x281   :  { %v1021_v44 = vpop.f32.mrb[81].mxu1  ;;  %1487 = vmatmul.mubr.bf16.gmra.mrb[112].mxu1 %v2587_v27 }
 0x282   :  { %v2389_v45 = vpop.f32.mrb[82].mxu1  ;;  %1310 = vmatmul.mubr.bf16.gmra.mrb[80].mxu0 %v2551_v37  ;;  %1494 = vmatprep.mubr.bf16.mxu1 %v2590_v40 }
 0x283   :  { %v1113_v46 = vpack.c.bf16 %v2389_v45, %v2388_v43  ;;  %v1024_v47 = vpop.f32.mrb[83].mxu1  ;;  %1317 = vmatprep.mubr.bf16.mxu0 %v2552_v42 }
 0x284   :  { %v1110_v48 = vpack.c.bf16 %v1024_v47, %v1021_v44 }
 0x286   :  { %2272 = vmatprep.subr.bf16.mxu0 %v1110_v48 }
 0x287   :  { %2273 = vmatpush3.bf16.msra.mxu0 %v1086_v14 }
 0x288   :  { %v2392_v54 = vpop.f32.mrb[84].mxu1  ;;  %2274 = vmatprep.subr.bf16.mxu0 %v1113_v46 }
 0x289   :  { %v1037_v55 = vpop.f32.mrb[85].mxu1  ;;  %1495 = vmatmul.mubr.bf16.gmra.mrb[116].mxu1 %v2593_v49 }
 0x28a   :  { %v2393_v56 = vpop.f32.mrb[86].mxu1  ;;  %1318 = vmatmul.mubr.bf16.gmra.mrb[84].mxu0 %v2554_v50  ;;  %1502 = vmatprep.mubr.bf16.mxu1 %v2596_v52 }
 0x28b   :  { %v1119_v57 = vpack.c.bf16 %v2393_v56, %v2392_v54  ;;  %v1040_v58 = vpop.f32.mrb[87].mxu1  ;;  %2275 = vmatpush3.bf16.msra.mxu0 %v1089_v12  ;;  %1325 = vmatprep.mubr.bf16.mxu0 %v2555_v53  ;;  %v2560_v12 = vld [vmem:[%s3436_s3 + $0xf0] ss:$8 sps:$4 sm:$0xff]  }
 0x28c   :  { %v1116_v59 = vpack.c.bf16 %v1040_v58, %v1037_v55 }
 0x28e   :  { %2276 = vmatprep.subr.bf16.mxu0 %v1116_v59  ;;  %v2610_v59 = vld [vmem:[%s3438_s7] sm:$0xff]  }
 0x28f   :  { %2277 = vmatpush3.bf16.msra.mxu0 %v1092_v26  ;;  %v2580_v26 = vld [vmem:[%s3436_s3 + $0x120] ss:$8 sps:$4 sm:$0xff]  }
 0x290   :  { %v2396_v3 = vpop.f32.mrb[88].mxu1  ;;  %2278 = vmatprep.subr.bf16.mxu0 %v1119_v57 }
 0x291   :  { %v1053_v4 = vpop.f32.mrb[89].mxu1  ;;  %1503 = vmatmul.mubr.bf16.gmra.mrb[120].mxu1 %v2599_v61 }
 0x292   :  { %v2397_v5 = vpop.f32.mrb[90].mxu1  ;;  %1326 = vmatmul.mubr.bf16.gmra.mrb[88].mxu0 %v2557_v63  ;;  %1510 = vmatprep.mubr.bf16.mxu1 %v2602_v1  ;;  %v2611_v63 = vld [vmem:[%s3438_s7 + $0x8] sm:$0xff]  }
 0x293   :  { %v1125_v6 = vpack.c.bf16 %v2397_v5, %v2396_v3  ;;  %v1056_v9 = vpop.f32.mrb[91].mxu1  ;;  %2279 = vmatpush3.bf16.msra.mxu0 %v1095_v24  ;;  %1333 = vmatprep.mubr.bf16.mxu0 %v2558_v2  ;;  %v2574_v24 = vld [vmem:[%s3436_s3 + $0x110] ss:$8 sps:$4 sm:$0xff]  }
 0x294   :  { %v1122_v10 = vpack.c.bf16 %v1056_v9, %v1053_v4 }
 0x296   :  { %2280 = vmatprep.subr.bf16.mxu0 %v1122_v10 }
 0x297   :  { %2281 = vmatpush3.bf16.msra.mxu0 %v1098_v39  ;;  %v2608_v39 = vld [vmem:[%s3436_s3 + $0x170] ss:$8 sps:$4 sm:$0xff]  }
 0x298   :  { %v2400_v14 = vpop.f32.mrb[92].mxu1  ;;  %2282 = vmatprep.subr.bf16.mxu0 %v1125_v6 }
 0x299   :  { %v1069_v15 = vpop.f32.mrb[93].mxu1  ;;  %1511 = vmatmul.mubr.bf16.gmra.mrb[124].mxu1 %v2605_v11 }
 0x29a   :  { %v2401_v16 = vpop.f32.mrb[94].mxu1  ;;  %1334 = vmatmul.mubr.bf16.gmra.mrb[92].mxu0 %v2560_v12  ;;  %2418 = vmatprep.mubr.msk.bf16.mxu1 %vm2620_vm1, %v2619_v0 }
 0x29b   :  { %v1131_v18 = vpack.c.bf16 %v2401_v16, %v2400_v14  ;;  %v1072_v20 = vpop.f32.mrb[95].mxu1  ;;  %2283 = vmatpush3.bf16.msra.mxu0 %v1101_v36  ;;  %1648 = vmatprep.mubr.bf16.mxu0 %v2566_v13  ;;  %v2604_v36 = vld [vmem:[%s3436_s3 + $0x160] ss:$8 sps:$4 sm:$0xff]  }
 0x29c   :  { %v1128_v21 = vpack.c.bf16 %v1072_v20, %v1069_v15  ;;  %v2612_v15 = vld [vmem:[%s3438_s7 + $0x10] sm:$0xff]  }
 0x29e   :  { %2284 = vmatprep.subr.bf16.mxu0 %v1128_v21 }
 0x29f   :  { %2285 = vmatpush3.bf16.msra.mxu0 %v1104_v17 }
 0x2a0   :  { %2286 = vmatprep.subr.bf16.mxu0 %v1131_v18 }
 0x2a3   :  { %2287 = vmatpush3.bf16.msra.mxu0 %v1107_v60 }
 0x2a4   :  { %2422 = vmatprep.subr.bf16.mxu0 %v2619_v0 }
 0x2a6   :  { %1649 = vmatmul.mubr.bf16.vlgmr.msra.gmra.mrb[96].mxu0 %v2564_v22  ;;  %v2613_v22 = vld [vmem:[%s3438_s7 + $0x18] sm:$0xff]  }
 0x2a7   :  { %1656 = vmatprep.mubr.bf16.mxu0 %v2570_v23  ;;  %2423 = vmatpush3.bf16.msra.mxu0 %v2610_v59 }
 0x2a8   :  { %2424 = vmatprep.subr.bf16.mxu0 %v2619_v0 }
 0x2ab   :  { %2425 = vmatpush3.bf16.msra.mxu0 %v2611_v63 }
 0x2ac   :  { %2426 = vmatprep.subr.bf16.mxu0 %v2619_v0 }
 0x2ae   :  { %1657 = vmatmul.mubr.bf16.gmra.mrb[100].mxu0 %v2574_v24 }
 0x2af   :  { %1664 = vmatprep.mubr.bf16.mxu0 %v2576_v25  ;;  %2427 = vmatpush3.bf16.msra.mxu0 %v2612_v15 }
 0x2b0   :  { %2428 = vmatprep.subr.bf16.mxu0 %v2619_v0 }
 0x2b3   :  { %2429 = vmatpush3.bf16.msra.mxu0 %v2613_v22 }
 0x2b4   :  { %2430 = vmatprep.subr.bf16.mxu0 %v2619_v0 }
 0x2b6   :  { %1665 = vmatmul.mubr.bf16.gmra.mrb[104].mxu0 %v2580_v26 }
 0x2b7   :  { %1672 = vmatprep.mubr.bf16.mxu0 %v2582_v28 }
 0x2be   :  { %1673 = vmatmul.mubr.bf16.gmra.mrb[108].mxu0 %v2586_v29 }
 0x2bf   :  { %1680 = vmatprep.mubr.bf16.mxu0 %v2588_v31 }
 0x2c6   :  { %1681 = vmatmul.mubr.bf16.gmra.mrb[112].mxu0 %v2592_v32 }
 0x2c7   :  { %1688 = vmatprep.mubr.bf16.mxu0 %v2594_v33 }
 0x2ce   :  { %1689 = vmatmul.mubr.bf16.gmra.mrb[116].mxu0 %v2598_v34 }
 0x2cf   :  { %1696 = vmatprep.mubr.bf16.mxu0 %v2600_v35  ;;  %v2614_v35 = vld [vmem:[%s3438_s7 + $0x20] sm:$0xff]  }
 0x2d0   :  { %2431 = vmatpush3.bf16.msra.mxu0 %v2614_v35 }
 0x2d1   :  { %2432 = vmatprep.subr.bf16.mxu0 %v2619_v0 }
 0x2d6   :  { %1697 = vmatmul.mubr.bf16.gmra.mrb[120].mxu0 %v2604_v36 }
 0x2d7   :  { %1704 = vmatprep.mubr.bf16.mxu0 %v2606_v38 }
 0x2de   :  { %1705 = vmatmul.mubr.bf16.gmra.mrb[124].mxu0 %v2608_v39 }
 0x2df   :  { %2438 = vmatprep.mubr.msk.bf16.mxu0 %vm2620_vm1, %v2619_v0 }
 0x334   :  { %v2224_v62 = vpop.f32.mrb[96].mxu1 }
 0x335   :  { %v2160_v8 = vpop.f32.mrb[64].mxu0  ;;  %v2225_v19 = vpop.f32.mrb[97].mxu1 }
 0x336   :  { %v2161_v30 = vpop.f32.mrb[65].mxu0  ;;  %v2226_v41 = vadd.f32 %v2225_v19, %v2224_v62  ;;  %v2227_v51 = vpop.f32.mrb[98].mxu1 }
 0x337   :  { %v2162_v60 = vadd.f32 %v2161_v30, %v2160_v8  ;;  %v2163_v7 = vpop.f32.mrb[66].mxu0  ;;  %v2228_v17 = vpop.f32.mrb[99].mxu1  ;;  %v2615_v8 = vld [vmem:[%s3438_s7 + $0x28] sm:$0xff]  }
 0x338   :  { %v2164_v27 = vpop.f32.mrb[67].mxu0  ;;  %v2229_v37 = vadd.f32 %v2228_v17, %v2227_v51  ;;  %2433 = vmatpush3.bf16.msra.mxu0 %v2615_v8 }
 0x339   :  { %v2165_v40 = vadd.f32 %v2164_v27, %v2163_v7  ;;  %v3311_v42 = vadd.f32 %v2226_v41, %v2162_v60  ;;  %2434 = vmatprep.subr.bf16.mxu0 %v2619_v0 }
 0x33b   :  { %v3313_v43 = vadd.f32 %v2229_v37, %v2165_v40 }
 0x33c   :  { %v2230_v44 = vpop.f32.mrb[100].mxu1 }
 0x33d   :  { %v2166_v45 = vpop.f32.mrb[68].mxu0  ;;  %v2231_v46 = vpop.f32.mrb[101].mxu1 }
 0x33e   :  { %v2167_v47 = vpop.f32.mrb[69].mxu0  ;;  %v2232_v48 = vadd.f32 %v2231_v46, %v2230_v44  ;;  %v2233_v49 = vpop.f32.mrb[102].mxu1  ;;  %v2616_v44 = vld [vmem:[%s3438_s7 + $0x30] sm:$0xff]  }
 0x33f   :  { %v2168_v50 = vadd.f32 %v2167_v47, %v2166_v45  ;;  %v2169_v52 = vpop.f32.mrb[70].mxu0  ;;  %v2234_v53 = vpop.f32.mrb[103].mxu1  ;;  %2435 = vmatpush3.bf16.msra.mxu0 %v2616_v44 }
 0x340   :  { %v2170_v54 = vpop.f32.mrb[71].mxu0  ;;  %v2235_v55 = vadd.f32 %v2234_v53, %v2233_v49  ;;  %2436 = vmatprep.subr.bf16.mxu0 %v2619_v0 }
 0x341   :  { %v2171_v56 = vadd.f32 %v2170_v54, %v2169_v52  ;;  %v3317_v57 = vadd.f32 %v2232_v48, %v2168_v50 }
 0x343   :  { %v3319_v58 = vadd.f32 %v2235_v55, %v2171_v56 }
 0x344   :  { %v2236_v61 = vpop.f32.mrb[104].mxu1 }
 0x345   :  { %v2172_v1 = vpop.f32.mrb[72].mxu0  ;;  %v2237_v2 = vpop.f32.mrb[105].mxu1 }
 0x346   :  { %v2173_v3 = vpop.f32.mrb[73].mxu0  ;;  %v2238_v4 = vadd.f32 %v2237_v2, %v2236_v61  ;;  %v2239_v5 = vpop.f32.mrb[106].mxu1 }
 0x347   :  { %v2174_v6 = vadd.f32 %v2173_v3, %v2172_v1  ;;  %v2175_v9 = vpop.f32.mrb[74].mxu0  ;;  %v2240_v10 = vpop.f32.mrb[107].mxu1 }
 0x348   :  { %v2176_v11 = vpop.f32.mrb[75].mxu0  ;;  %v2241_v12 = vadd.f32 %v2240_v10, %v2239_v5 }
 0x349   :  { %v2177_v13 = vadd.f32 %v2176_v11, %v2175_v9  ;;  %v3328_v14 = vadd.f32 %v2238_v4, %v2174_v6 }
 0x34b   :  { %v3334_v16 = vadd.f32 %v2241_v12, %v2177_v13 }
 0x34c   :  { %v2242_v18 = vpop.f32.mrb[108].mxu1 }
 0x34d   :  { %v2178_v20 = vpop.f32.mrb[76].mxu0  ;;  %v2243_v21 = vpop.f32.mrb[109].mxu1 }
 0x34e   :  { %v2179_v23 = vpop.f32.mrb[77].mxu0  ;;  %v2244_v24 = vadd.f32 %v2243_v21, %v2242_v18  ;;  %v2245_v25 = vpop.f32.mrb[110].mxu1 }
 0x34f   :  { %v2180_v26 = vadd.f32 %v2179_v23, %v2178_v20  ;;  %v2181_v28 = vpop.f32.mrb[78].mxu0  ;;  %v2246_v29 = vpop.f32.mrb[111].mxu1 }
 0x350   :  { %v2182_v31 = vpop.f32.mrb[79].mxu0  ;;  %v2247_v32 = vadd.f32 %v2246_v29, %v2245_v25 }
 0x351   :  { %v2183_v33 = vadd.f32 %v2182_v31, %v2181_v28  ;;  %v3340_v34 = vadd.f32 %v2244_v24, %v2180_v26 }
 0x353   :  { %v3346_v36 = vadd.f32 %v2247_v32, %v2183_v33 }
 0x354   :  { %v2248_v38 = vpop.f32.mrb[112].mxu1 }
 0x355   :  { %v2184_v39 = vpop.f32.mrb[80].mxu0  ;;  %v2249_v62 = vpop.f32.mrb[113].mxu1 }
 0x356   :  { %v2185_v19 = vpop.f32.mrb[81].mxu0  ;;  %v2250_v30 = vadd.f32 %v2249_v62, %v2248_v38  ;;  %v2251_v41 = vpop.f32.mrb[114].mxu1 }
 0x357   :  { %v2186_v51 = vadd.f32 %v2185_v19, %v2184_v39  ;;  %v2187_v60 = vpop.f32.mrb[82].mxu0  ;;  %v2252_v7 = vpop.f32.mrb[115].mxu1 }
 0x358   :  { %v2188_v17 = vpop.f32.mrb[83].mxu0  ;;  %v2253_v27 = vadd.f32 %v2252_v7, %v2251_v41 }
 0x359   :  { %v2189_v37 = vadd.f32 %v2188_v17, %v2187_v60  ;;  %v3352_v40 = vadd.f32 %v2250_v30, %v2186_v51  ;;  %v3376_v51 = vld [vmem:[%s3439_s5] ss:$0 sm:$0xff] }
 0x35b   :  { %v3358_v45 = vadd.f32 %v2253_v27, %v2189_v37 }
 0x35c   :  { %v2254_v46 = vpop.f32.mrb[116].mxu1 }
 0x35d   :  { %v2190_v47 = vpop.f32.mrb[84].mxu0  ;;  %v2255_v48 = vpop.f32.mrb[117].mxu1 }
 0x35e   :  { %v2191_v49 = vpop.f32.mrb[85].mxu0  ;;  %v2256_v50 = vadd.f32 %v2255_v48, %v2254_v46  ;;  %v2257_v52 = vpop.f32.mrb[118].mxu1 }
 0x35f   :  { %v2192_v53 = vadd.f32 %v2191_v49, %v2190_v47  ;;  %v2193_v54 = vpop.f32.mrb[86].mxu0  ;;  %v2258_v55 = vpop.f32.mrb[119].mxu1 }
 0x360   :  { %v2194_v56 = vpop.f32.mrb[87].mxu0  ;;  %v2259_v59 = vadd.f32 %v2258_v55, %v2257_v52 }
 0x361   :  { %v2195_v61 = vadd.f32 %v2194_v56, %v2193_v54  ;;  %v3361_v63 = vadd.f32 %v2256_v50, %v2192_v53 }
 0x363   :  { %v3363_v1 = vadd.f32 %v2259_v59, %v2195_v61 }
 0x364   :  { %v2260_v2 = vpop.f32.mrb[120].mxu1 }
 0x365   :  { %v2196_v3 = vpop.f32.mrb[88].mxu0  ;;  %v2261_v4 = vpop.f32.mrb[121].mxu1 }
 0x366   :  { %v2197_v5 = vpop.f32.mrb[89].mxu0  ;;  %v2262_v6 = vadd.f32 %v2261_v4, %v2260_v2  ;;  %v2263_v9 = vpop.f32.mrb[122].mxu1 }
 0x367   :  { %v2198_v10 = vadd.f32 %v2197_v5, %v2196_v3  ;;  %v2199_v11 = vpop.f32.mrb[90].mxu0  ;;  %v2264_v12 = vpop.f32.mrb[123].mxu1 }
 0x368   :  { %v2200_v13 = vpop.f32.mrb[91].mxu0  ;;  %v2265_v15 = vadd.f32 %v2264_v12, %v2263_v9 }
 0x369   :  { %v2201_v18 = vadd.f32 %v2200_v13, %v2199_v11  ;;  %v3365_v20 = vadd.f32 %v2262_v6, %v2198_v10 }
 0x36b   :  { %v3367_v21 = vadd.f32 %v2265_v15, %v2201_v18 }
 0x36c   :  { %v2266_v22 = vpop.f32.mrb[124].mxu1 }
 0x36d   :  { %v2202_v23 = vpop.f32.mrb[92].mxu0  ;;  %v2267_v24 = vpop.f32.mrb[125].mxu1 }
 0x36e   :  { %v2203_v25 = vpop.f32.mrb[93].mxu0  ;;  %v2268_v26 = vadd.f32 %v2267_v24, %v2266_v22  ;;  %v2269_v28 = vpop.f32.mrb[126].mxu1 }
 0x36f   :  { %v2204_v29 = vadd.f32 %v2203_v25, %v2202_v23  ;;  %v2205_v31 = vpop.f32.mrb[94].mxu0  ;;  %v2270_v32 = vpop.f32.mrb[127].mxu1 }
 0x370   :  { %v2206_v33 = vpop.f32.mrb[95].mxu0  ;;  %v2271_v35 = vadd.f32 %v2270_v32, %v2269_v28 }
 0x371   :  { %v2207_v38 = vadd.f32 %v2206_v33, %v2205_v31  ;;  %v3369_v39 = vadd.f32 %v2268_v26, %v2204_v29 }
 0x373   :  { %v3371_v62 = vadd.f32 %v2271_v35, %v2207_v38 }
 0x379   :  { %v2288_v8 = vpop.f32.mrb[96].mxu0 }
 0x37a   :  { %v2289_v19 = vpop.f32.mrb[97].mxu0 }
 0x37b   :  { %v2290_v30 = vadd.f32 %v2289_v19, %v2288_v8  ;;  %v2291_v41 = vpop.f32.mrb[98].mxu0 }
 0x37c   :  { %v2292_v60 = vpop.f32.mrb[99].mxu0 }
 0x37d   :  { %v1713_v7 = vadd.f32 %v2290_v30, %v3311_v42  ;;  %v2293_v17 = vadd.f32 %v2292_v60, %v2291_v41 }
 0x37f   :  { %v1736_v27 = vadd.f32 %v3376_v51, %v1713_v7  ;;  %v1714_v37 = vadd.f32 %v2293_v17, %v3313_v43 }
 0x381   :  { %v1737_v44 = vadd.f32 %v3376_v51, %v1714_v37  ;;  %v2294_v46 = vpop.f32.mrb[100].mxu0  ;;  %v1752_v48 = vmax.f32 %v1736_v27, 0.0 }
 0x382   :  { %v2295_v47 = vpop.f32.mrb[101].mxu0 }
 0x383   :  { %v1753_v49 = vmax.f32 %v1737_v44, 0.0  ;;  %v2296_v50 = vadd.f32 %v2295_v47, %v2294_v46  ;;  %v2297_v52 = vpop.f32.mrb[102].mxu0 }
 0x384   :  { %v2298_v53 = vpop.f32.mrb[103].mxu0 }
 0x385   :  { %v1768_v54 = vpack.c.bf16 %v1753_v49, %v1752_v48  ;;  %v1715_v55 = vadd.f32 %v2296_v50, %v3317_v57  ;;  %v2299_v56 = vadd.f32 %v2298_v53, %v2297_v52 }
 0x387   :  { %v1738_v42 = vadd.f32 %v3376_v51, %v1715_v55  ;;  %v1716_v59 = vadd.f32 %v2299_v56, %v3319_v58  ;;  %2403 = vmatpush3.bf16.msra.mxu1 %v1768_v54 }
 0x388   :  { %2404 = vmatprep.subr.bf16.mxu1 %v2619_v0 }
 0x389   :  { %v1739_v43 = vadd.f32 %v3376_v51, %v1716_v59  ;;  %v2300_v61 = vpop.f32.mrb[104].mxu0  ;;  %v1754_v3 = vmax.f32 %v1738_v42, 0.0 }
 0x38a   :  { %v2301_v2 = vpop.f32.mrb[105].mxu0 }
 0x38b   :  { %v1755_v4 = vmax.f32 %v1739_v43, 0.0  ;;  %v2302_v5 = vadd.f32 %v2301_v2, %v2300_v61  ;;  %v2303_v6 = vpop.f32.mrb[106].mxu0 }
 0x38c   :  { %v2304_v9 = vpop.f32.mrb[107].mxu0 }
 0x38d   :  { %v1769_v10 = vpack.c.bf16 %v1755_v4, %v1754_v3  ;;  %v1717_v57 = vadd.f32 %v2302_v5, %v3328_v14  ;;  %v2305_v11 = vadd.f32 %v2304_v9, %v2303_v6 }
 0x38f   :  { %v1740_v12 = vadd.f32 %v3376_v51, %v1717_v57  ;;  %v1718_v58 = vadd.f32 %v2305_v11, %v3334_v16  ;;  %2405 = vmatpush3.bf16.msra.mxu1 %v1769_v10 }
 0x390   :  { %2406 = vmatprep.subr.bf16.mxu1 %v2619_v0 }
 0x391   :  { %v1741_v13 = vadd.f32 %v3376_v51, %v1718_v58  ;;  %v2306_v15 = vpop.f32.mrb[108].mxu0  ;;  %v1756_v22 = vmax.f32 %v1740_v12, 0.0 }
 0x392   :  { %v2307_v18 = vpop.f32.mrb[109].mxu0 }
 0x393   :  { %v1757_v23 = vmax.f32 %v1741_v13, 0.0  ;;  %v2308_v24 = vadd.f32 %v2307_v18, %v2306_v15  ;;  %v2309_v25 = vpop.f32.mrb[110].mxu0 }
 0x394   :  { %v2310_v26 = vpop.f32.mrb[111].mxu0 }
 0x395   :  { %v1770_v28 = vpack.c.bf16 %v1757_v23, %v1756_v22  ;;  %v1719_v14 = vadd.f32 %v2308_v24, %v3340_v34  ;;  %v2311_v29 = vadd.f32 %v2310_v26, %v2309_v25 }
 0x397   :  { %v1742_v31 = vadd.f32 %v3376_v51, %v1719_v14  ;;  %v1720_v16 = vadd.f32 %v2311_v29, %v3346_v36  ;;  %2407 = vmatpush3.bf16.msra.mxu1 %v1770_v28  ;;  %v2609_v14 = vld [vmem:[%s3437_s6] sm:$0xff]  }
 0x398   :  { %2408 = vmatprep.subr.bf16.mxu1 %v2619_v0 }
 0x399   :  { %v1743_v32 = vadd.f32 %v3376_v51, %v1720_v16  ;;  %v2312_v33 = vpop.f32.mrb[112].mxu0  ;;  %v1758_v38 = vmax.f32 %v1742_v31, 0.0 }
 0x39a   :  { %v2313_v35 = vpop.f32.mrb[113].mxu0 }
 0x39b   :  { %v1759_v8 = vmax.f32 %v1743_v32, 0.0  ;;  %v2314_v19 = vadd.f32 %v2313_v35, %v2312_v33  ;;  %v2315_v30 = vpop.f32.mrb[114].mxu0 }
 0x39c   :  { %v2316_v41 = vpop.f32.mrb[115].mxu0 }
 0x39d   :  { %v1771_v60 = vpack.c.bf16 %v1759_v8, %v1758_v38  ;;  %v1721_v34 = vadd.f32 %v2314_v19, %v3352_v40  ;;  %v2317_v7 = vadd.f32 %v2316_v41, %v2315_v30 }
 0x39f   :  { %v1744_v17 = vadd.f32 %v3376_v51, %v1721_v34  ;;  %v1722_v36 = vadd.f32 %v2317_v7, %v3358_v45  ;;  %2409 = vmatpush3.bf16.msra.mxu1 %v1771_v60 }
 0x3a0   :  { %2410 = vmatprep.subr.bf16.mxu1 %v2619_v0 }
 0x3a1   :  { %v1745_v27 = vadd.f32 %v3376_v51, %v1722_v36  ;;  %v2318_v37 = vpop.f32.mrb[116].mxu0  ;;  %v1760_v46 = vmax.f32 %v1744_v17, 0.0 }
 0x3a2   :  { %v2319_v44 = vpop.f32.mrb[117].mxu0 }
 0x3a3   :  { %v1761_v47 = vmax.f32 %v1745_v27, 0.0  ;;  %v2320_v48 = vadd.f32 %v2319_v44, %v2318_v37  ;;  %v2321_v49 = vpop.f32.mrb[118].mxu0 }
 0x3a4   :  { %v2322_v50 = vpop.f32.mrb[119].mxu0 }
 0x3a5   :  { %v1772_v52 = vpack.c.bf16 %v1761_v47, %v1760_v46  ;;  %v1723_v40 = vadd.f32 %v2320_v48, %v3361_v63  ;;  %v2323_v53 = vadd.f32 %v2322_v50, %v2321_v49 }
 0x3a7   :  { %v1746_v54 = vadd.f32 %v3376_v51, %v1723_v40  ;;  %v1724_v45 = vadd.f32 %v2323_v53, %v3363_v1  ;;  %2411 = vmatpush3.bf16.msra.mxu1 %v1772_v52 }
 0x3a8   :  { %2412 = vmatprep.subr.bf16.mxu1 %v2619_v0 }
 0x3a9   :  { %v1747_v55 = vadd.f32 %v3376_v51, %v1724_v45  ;;  %v2324_v56 = vpop.f32.mrb[120].mxu0  ;;  %v1762_v59 = vmax.f32 %v1746_v54, 0.0 }
 0x3aa   :  { %v2325_v42 = vpop.f32.mrb[121].mxu0 }
 0x3ab   :  { %v1763_v43 = vmax.f32 %v1747_v55, 0.0  ;;  %v2326_v61 = vadd.f32 %v2325_v42, %v2324_v56  ;;  %v2327_v2 = vpop.f32.mrb[122].mxu0 }
 0x3ac   :  { %v2328_v3 = vpop.f32.mrb[123].mxu0 }
 0x3ad   :  { %v1773_v4 = vpack.c.bf16 %v1763_v43, %v1762_v59  ;;  %v1725_v63 = vadd.f32 %v2326_v61, %v3365_v20  ;;  %v2329_v5 = vadd.f32 %v2328_v3, %v2327_v2 }
 0x3af   :  { %v1748_v6 = vadd.f32 %v3376_v51, %v1725_v63  ;;  %v1726_v1 = vadd.f32 %v2329_v5, %v3367_v21  ;;  %2413 = vmatpush3.bf16.msra.mxu1 %v1773_v4 }
 0x3b0   :  { %2414 = vmatprep.subr.bf16.mxu1 %v2619_v0 }
 0x3b1   :  { %v1749_v9 = vadd.f32 %v3376_v51, %v1726_v1  ;;  %v2330_v10 = vpop.f32.mrb[124].mxu0  ;;  %v1764_v11 = vmax.f32 %v1748_v6, 0.0 }
 0x3b2   :  { %v2331_v57 = vpop.f32.mrb[125].mxu0 }
 0x3b3   :  { %v1765_v12 = vmax.f32 %v1749_v9, 0.0  ;;  %v2332_v58 = vadd.f32 %v2331_v57, %v2330_v10  ;;  %v2333_v13 = vpop.f32.mrb[126].mxu0 }
 0x3b4   :  { %v2334_v15 = vpop.f32.mrb[127].mxu0 }
 0x3b5   :  { %v1774_v18 = vpack.c.bf16 %v1765_v12, %v1764_v11  ;;  %v1727_v20 = vadd.f32 %v2332_v58, %v3369_v39  ;;  %v2335_v22 = vadd.f32 %v2334_v15, %v2333_v13  ;;  %v2617_v39 = vld [vmem:[%s3438_s7 + $0x38] sm:$0xff]  }
 0x3b6   :  { %2437 = vmatpush3.bf16.msra.mxu0 %v2617_v39 }
 0x3b7   :  { %v1750_v23 = vadd.f32 %v3376_v51, %v1727_v20  ;;  %v1728_v21 = vadd.f32 %v2335_v22, %v3371_v62  ;;  %2415 = vmatpush3.bf16.msra.mxu1 %v1774_v18 }
 0x3b8   :  { %2416 = vmatprep.subr.bf16.mxu1 %v2619_v0 }
 0x3b9   :  { %v1751_v24 = vadd.f32 %v3376_v51, %v1728_v21  ;;  %v1766_v25 = vmax.f32 %v1750_v23, 0.0  ;;  %v2111_v51 = vld [vmem:[%s3440_s8] ss:$0 sm:$0xff] }
 0x3bb   :  { %v1767_v26 = vmax.f32 %v1751_v24, 0.0 }
 0x3bd   :  { %v1775_v28 = vpack.c.bf16 %v1767_v26, %v1766_v25 }
 0x3bf   :  { %2417 = vmatpush3.bf16.msra.mxu1 %v1775_v28 }
 0x3c2   :  { %2419 = vmatmul.mubr.bf16.vlgmr.msra.gmra.mrb[128].mxu1 %v2609_v14 }
 0x495   :  { %v1818_v62 = vpop.f32.mrb[128].mxu1 }
 0x496   :  { %v2420_v29 = vpop.f32.mrb[129].mxu1 }
 0x497   :  { %v1821_v31 = vpop.f32.mrb[130].mxu1 }
 0x498   :  { %v1825_v0 = vpack.c.bf16 %v1821_v31, %v1818_v62  ;;  %v2421_v16 = vpop.f32.mrb[131].mxu1 }
 0x49a   :  { %2439 = vmatmul.mubr.bf16.vlgmr.msra.gmra.mrb[128].mxu0 %v1825_v0 }
 0x56d   :  { %v1931_v32 = vpop.f32.mrb[128].mxu0 }
 0x56e   :  { %v1932_v33 = vadd.f32 %v2111_v51, %v1931_v32  ;;  %v2440_v35 = vpop.f32.mrb[129].mxu0 }
 0x56f   :  { %v1934_v38 = vpop.f32.mrb[130].mxu0 }
 0x570   :  { %1938 = vst [vmem:[%s3441_s9] sm:$0xff] %v1932_v33  ;;  %v1935_v8 = vadd.f32 %v2111_v51, %v1934_v38  ;;  %v2441_v19 = vpop.f32.mrb[131].mxu0 }
 0x572   :  { %1939 = vst [vmem:[%s3441_s9 + $0x8] sm:$0xff] %v1935_v8 }

</bundles_post_ra>
